<compile_context>
chip_gen: v5e
topology: v5e:2x2
jax: 0.10.0
libtpu: 0.0.40
codegen_flags: <defaults>
</compile_context>

<pallas_src>
import functools
import math

import jax
import jax.numpy as jnp
import numpy as np
from jax.experimental import pallas as pl
from jax.experimental.pallas import tpu as pltpu

EPS = 1e-5  # PyTorch LayerNorm default


def _layernorm(h, gamma, beta):
    mu = jnp.mean(h, axis=-1, keepdims=True)
    var = jnp.mean((h - mu) ** 2, axis=-1, keepdims=True)
    return (h - mu) * jax.lax.rsqrt(var + EPS) * gamma + beta


def tile_encoder_kernel(
    x_ref,
    w1_ref, b1_ref, g2_ref, be2_ref,
    g0_ref, be0_ref,
    wq_ref, bq_ref, wk_ref, bk_ref, wv_ref, bv_ref,
    wo_ref, bo_ref,
    g1_ref, be1_ref,
    wf1_ref, bf1_ref, wf2_ref, bf2_ref,
    wp_ref, bp_ref, gn_ref, bn_ref,
    out_ref,
    attn_scratch,
    *, batch, num_tiles, num_layers, num_heads, model_dim, compute_dtype,
):
    B, T, D = batch, num_tiles, model_dim
    dh = D // num_heads
    scale = 1.0 / math.sqrt(dh)
    cd = compute_dtype

    def mm(a, w):
        # MXU matmul in `compute_dtype`, f32 accumulation.
        return jnp.dot(a.astype(cd), w.astype(cd), preferred_element_type=jnp.float32)

    # first_layer -> norm_2 -> ReLU, on the whole folded (B*T, .) slab.
    x = x_ref[...]
    h = mm(x, w1_ref[...]) + b1_ref[...]
    h = jnp.maximum(_layernorm(h, g2_ref[...], be2_ref[...]), 0.0)

    for l in range(num_layers):
        # ---- sublayer 0: x + MHA(LayerNorm(x)) ----
        hn = _layernorm(h, g0_ref[l], be0_ref[l])
        q = mm(hn, wq_ref[l]) + bq_ref[l]
        k = mm(hn, wk_ref[l]) + bk_ref[l]
        v = mm(hn, wv_ref[l]) + bv_ref[l]
        # Split the folded rows back into (B, T, D) for batched attention
        # (leading-dim reshape only; lane layout unchanged).
        q3 = (q * scale).reshape(B, T, D)
        k3 = k.reshape(B, T, D)
        v3 = v.reshape(B, T, D)

        for hd in range(num_heads):
            sl = slice(hd * dh, (hd + 1) * dh)
            qh, kh, vh = q3[:, :, sl], k3[:, :, sl], v3[:, :, sl]
            s = jnp.einsum("bqd,bkd->bqk", qh.astype(cd), kh.astype(cd),
                           preferred_element_type=jnp.float32)
            m = jnp.max(s, axis=-1, keepdims=True)
            e = jnp.exp(s - m)
            p = e * pl.reciprocal(jnp.sum(e, axis=-1, keepdims=True), approx=True)
            oh = jnp.einsum("bqk,bkd->bqd", p.astype(cd), vh.astype(cd),
                            preferred_element_type=jnp.float32)
            # Concatenate heads by writing into the matching lane slice of the
            # VMEM scratch -> one full-K output projection below.
            attn_scratch[:, :, sl] = oh

        attn = attn_scratch[...].reshape(B * T, D)
        h = h + mm(attn, wo_ref[l]) + bo_ref[l]

        # ---- sublayer 1: x + FFN(LayerNorm(x)) ----
        hn = _layernorm(h, g1_ref[l], be1_ref[l])
        f = jnp.maximum(mm(hn, wf1_ref[l]) + bf1_ref[l], 0.0)
        h = h + mm(f, wf2_ref[l]) + bf2_ref[l]

    # out_proj -> norm -> ReLU (ReLU commutes with the (B, -1) reshape).
    p = mm(h, wp_ref[...]) + bp_ref[...]
    p = _layernorm(p, gn_ref[...], bn_ref[...])
    out_ref[...] = jnp.maximum(p, 0.0).astype(out_ref.dtype)


# Indices (in the params list below) of the matmul weight matrices that are
# cast to the MXU compute dtype in the wrapper.
_WEIGHT_IDX = frozenset({0, 6, 8, 10, 12, 16, 18, 20})


def tile_encoder_forward(x, params, *, num_heads, num_layers, model_dim, out_dim,
                         compute_dtype=jnp.float32):
    B, T, tile_in = x.shape
    assert model_dim % num_heads == 0, "model_dim must be divisible by num_heads"

    # Fold batch into the matmul M dimension (free reshape outside the kernel).
    x2 = x.reshape(B * T, tile_in)

    # Cast weight matrices (only) to the compute dtype outside the kernel so
    # their VMEM footprint shrinks for bf16; LN params / biases stay f32.
    params_cast = [p.astype(compute_dtype) if i in _WEIGHT_IDX else p
                   for i, p in enumerate(params)]

    # Resident working set (grid-less call => single copy, nothing double-buffered).
    work_bytes = x2.size * x2.dtype.itemsize + B * T * out_dim * 4
    work_bytes += sum(int(np.prod(p.shape)) * jnp.dtype(p.dtype).itemsize
                      for p in params_cast)
    work_bytes += 8 * B * T * max(2 * model_dim, out_dim) * 4  # live activations
    vmem_limit = int(min(max(4 * work_bytes, 32 << 20), 56 << 20))  # <=~56 MiB (v7x safe)

    kernel = functools.partial(
        tile_encoder_kernel,
        batch=B, num_tiles=T,
        num_layers=num_layers, num_heads=num_heads, model_dim=model_dim,
        compute_dtype=compute_dtype,
    )

    # TODO(synk): for large num_layers/model_dim (v7x: 64 MiB VMEM), move the layer
    # index onto an "arbitrary" grid axis and stream per-layer weights via BlockSpec
    # index maps instead of keeping every layer resident.
    # TODO(synk): for large B, tile the folded B*T rows over a "parallel" grid axis
    # so v7x's two TensorCores split the batch.
    out2 = pl.pallas_call(
        kernel,
        out_shape=jax.ShapeDtypeStruct((B * T, out_dim), jnp.float32),
        scratch_shapes=[pltpu.VMEM((B, T, model_dim), jnp.float32)],
        compiler_params=pltpu.CompilerParams(vmem_limit_bytes=vmem_limit),
    )(x2, *params_cast)

    # Equivalent to the module's .reshape(batch, -1); done in the wrapper so the
    # kernel avoids an in-kernel (B*T, out_dim) -> (B, T*out_dim) lane relayout.
    return out2.reshape(B, T * out_dim)


def make_params(key, tile_in_dim, d, num_heads, num_layers, out_dim):
    """Deterministic synthetic parameters (orthogonal init replaced by scaled normal)."""
    ks = iter(jax.random.split(key, 64))

    def w(din, dout):
        return 0.1 * jax.random.normal(next(ks), (din, dout), jnp.float32)

    def wl(din, dout):
        return 0.1 * jax.random.normal(next(ks), (num_layers, din, dout), jnp.float32)

    def bl(dout):
        return 0.01 * jax.random.normal(next(ks), (num_layers, 1, dout), jnp.float32)

    d_ff = 2 * d  # FeedForwardNet width_mult = 2
    params = [
        w(tile_in_dim, d),                       # 0  w1
        jnp.zeros((1, d), jnp.float32),          # 1  b1
        jnp.ones((1, d), jnp.float32),           # 2  norm_2 gamma
        jnp.zeros((1, d), jnp.float32),          # 3  norm_2 beta
        jnp.ones((num_layers, 1, d), jnp.float32),   # 4  sublayer0 LN gamma
        jnp.zeros((num_layers, 1, d), jnp.float32),  # 5  sublayer0 LN beta
        wl(d, d), bl(d),                         # 6,7   Wq, bq
        wl(d, d), bl(d),                         # 8,9   Wk, bk
        wl(d, d), bl(d),                         # 10,11 Wv, bv
        wl(d, d), bl(d),                         # 12,13 Wo, bo
        jnp.ones((num_layers, 1, d), jnp.float32),   # 14 sublayer1 LN gamma
        jnp.zeros((num_layers, 1, d), jnp.float32),  # 15 sublayer1 LN beta
        wl(d, d_ff), bl(d_ff),                   # 16,17 FFN linear1
        wl(d_ff, d), bl(d),                      # 18,19 FFN linear2
        w(d, out_dim),                           # 20 out_proj W
        jnp.zeros((1, out_dim), jnp.float32),    # 21 out_proj b
        jnp.ones((1, out_dim), jnp.float32),     # 22 final norm gamma
        jnp.zeros((1, out_dim), jnp.float32),    # 23 final norm beta
    ]
    return params


def reference_forward(x, params, *, num_heads, num_layers, model_dim):
    (w1, b1, g2, be2, g0, be0, wq, bq, wk, bk, wv, bv, wo, bo,
     g1, be1, wf1, bf1, wf2, bf2, wp, bp, gn, bn) = params
    B, T, _ = x.shape
    dh = model_dim // num_heads

    def ln(h, g, b):
        mu = jnp.mean(h, axis=-1, keepdims=True)
        var = jnp.mean((h - mu) ** 2, axis=-1, keepdims=True)
        return (h - mu) * jax.lax.rsqrt(var + EPS) * g + b

    h = jnp.maximum(ln(x @ w1 + b1, g2, be2), 0.0)
    for l in range(num_layers):
        hn = ln(h, g0[l], be0[l])
        q = hn @ wq[l] + bq[l]
        k = hn @ wk[l] + bk[l]
        v = hn @ wv[l] + bv[l]
        qh = q.reshape(B, T, num_heads, dh).transpose(0, 2, 1, 3)
        kh = k.reshape(B, T, num_heads, dh).transpose(0, 2, 1, 3)
        vh = v.reshape(B, T, num_heads, dh).transpose(0, 2, 1, 3)
        scores = (qh @ kh.transpose(0, 1, 3, 2)) / np.sqrt(dh)
        att = jax.nn.softmax(scores, axis=-1)
        o = (att @ vh).transpose(0, 2, 1, 3).reshape(B, T, model_dim)
        h = h + (o @ wo[l] + bo[l])

        hn = ln(h, g1[l], be1[l])
        f = jnp.maximum(hn @ wf1[l] + bf1[l], 0.0) @ wf2[l] + bf2[l]
        h = h + f

    p = ln(h @ wp + bp, gn, bn)
    return jnp.maximum(p, 0.0).reshape(B, -1)


if __name__ == "__main__":
    # small shapes consistent with TileEncoder.forward
    batch, num_tiles = 2, 8
    tile_in_dim, model_dim = 16, 32
    num_heads, num_layers, out_proj_dim = 4, 2, 16

    key = jax.random.PRNGKey(0)
    kx, kp = jax.random.split(key)
    x = jax.random.normal(kx, (batch, num_tiles, tile_in_dim), jnp.float32)
    params = make_params(kp, tile_in_dim, model_dim, num_heads, num_layers, out_proj_dim)

    ref = jax.block_until_ready(
        reference_forward(x, params, num_heads=num_heads,
                          num_layers=num_layers, model_dim=model_dim))

    # f32 MXU path — tight correctness check.
    out = jax.block_until_ready(tile_encoder_forward(
        x, params, num_heads=num_heads, num_layers=num_layers,
        model_dim=model_dim, out_dim=out_proj_dim, compute_dtype=jnp.float32))
    assert out.shape == (batch, num_tiles * out_proj_dim)
    np.testing.assert_allclose(np.asarray(out), np.asarray(ref), rtol=2e-2, atol=2e-2)

    # bf16 MXU path (v6e/v7x fast path; f32 accumulation / LN / softmax stats) —
    # loose check against the f32 reference.
    out_bf16 = jax.block_until_ready(tile_encoder_forward(
        x, params, num_heads=num_heads, num_layers=num_layers,
        model_dim=model_dim, out_dim=out_proj_dim, compute_dtype=jnp.bfloat16))
    assert out_bf16.shape == (batch, num_tiles * out_proj_dim)
    np.testing.assert_allclose(np.asarray(out_bf16), np.asarray(ref),
                               rtol=1.5e-1, atol=1.5e-1)

    print("KERNEL_OK")
</pallas_src>

<mosaic_0001>
module attributes {stable_mosaic.version = 11 : i64} {
  func.func @tile_encoder_kernel(%arg0: memref<16x16xf32, #tpu.memory_space<vmem>>, %arg1: memref<16x32xf32, #tpu.memory_space<vmem>>, %arg2: memref<1x32xf32, #tpu.memory_space<vmem>>, %arg3: memref<1x32xf32, #tpu.memory_space<vmem>>, %arg4: memref<1x32xf32, #tpu.memory_space<vmem>>, %arg5: memref<2x1x32xf32, #tpu.memory_space<vmem>>, %arg6: memref<2x1x32xf32, #tpu.memory_space<vmem>>, %arg7: memref<2x32x32xf32, #tpu.memory_space<vmem>>, %arg8: memref<2x1x32xf32, #tpu.memory_space<vmem>>, %arg9: memref<2x32x32xf32, #tpu.memory_space<vmem>>, %arg10: memref<2x1x32xf32, #tpu.memory_space<vmem>>, %arg11: memref<2x32x32xf32, #tpu.memory_space<vmem>>, %arg12: memref<2x1x32xf32, #tpu.memory_space<vmem>>, %arg13: memref<2x32x32xf32, #tpu.memory_space<vmem>>, %arg14: memref<2x1x32xf32, #tpu.memory_space<vmem>>, %arg15: memref<2x1x32xf32, #tpu.memory_space<vmem>>, %arg16: memref<2x1x32xf32, #tpu.memory_space<vmem>>, %arg17: memref<2x32x64xf32, #tpu.memory_space<vmem>>, %arg18: memref<2x1x64xf32, #tpu.memory_space<vmem>>, %arg19: memref<2x64x32xf32, #tpu.memory_space<vmem>>, %arg20: memref<2x1x32xf32, #tpu.memory_space<vmem>>, %arg21: memref<32x16xf32, #tpu.memory_space<vmem>>, %arg22: memref<1x16xf32, #tpu.memory_space<vmem>>, %arg23: memref<1x16xf32, #tpu.memory_space<vmem>>, %arg24: memref<1x16xf32, #tpu.memory_space<vmem>>, %arg25: memref<16x16xf32, #tpu.memory_space<vmem>>, %arg26: memref<2x8x32xf32, #tpu.memory_space<vmem>>) attributes {dimension_semantics = [], scalar_prefetch = 0 : i64, scratch_operands = 1 : i64, tpu.core_type = #tpu.core_type<tc>} {
    %c0 = arith.constant 0 : index
    %c0_0 = arith.constant 0 : index
    %0 = vector.load %arg0[%c0, %c0_0] : memref<16x16xf32, #tpu.memory_space<vmem>>, vector<16x16xf32>
    %c0_1 = arith.constant 0 : index
    %c0_2 = arith.constant 0 : index
    %1 = vector.load %arg1[%c0_1, %c0_2] : memref<16x32xf32, #tpu.memory_space<vmem>>, vector<16x32xf32>
    %cst = arith.constant dense<0.000000e+00> : vector<16x32xf32>
    %2 = tpu.matmul %0, %1, %cst {dimension_numbers = #tpu.dot_dimension_numbers<[1], [0], [0], [1], [0, 0, 1, 1], [], []>} : vector<16x16xf32>, vector<16x32xf32>, vector<16x32xf32> -> vector<16x32xf32>
    %c0_3 = arith.constant 0 : index
    %c0_4 = arith.constant 0 : index
    %3 = vector.load %arg2[%c0_3, %c0_4] : memref<1x32xf32, #tpu.memory_space<vmem>>, vector<1x32xf32>
    %4 = vector.broadcast %3 : vector<1x32xf32> to vector<16x32xf32>
    %5 = arith.addf %2, %4 : vector<16x32xf32>
    %c0_5 = arith.constant 0 : index
    %c0_6 = arith.constant 0 : index
    %6 = vector.load %arg3[%c0_5, %c0_6] : memref<1x32xf32, #tpu.memory_space<vmem>>, vector<1x32xf32>
    %c0_7 = arith.constant 0 : index
    %c0_8 = arith.constant 0 : index
    %7 = vector.load %arg4[%c0_7, %c0_8] : memref<1x32xf32, #tpu.memory_space<vmem>>, vector<1x32xf32>
    %cst_9 = arith.constant dense<0.000000e+00> : vector<16xf32>
    %8 = vector.multi_reduction <add>, %5, %cst_9 [1] : vector<16x32xf32> to vector<16xf32>
    %9 = vector.shape_cast %8 : vector<16xf32> to vector<16x1xf32>
    %cst_10 = arith.constant 3.200000e+01 : f32
    %10 = vector.broadcast %cst_10 : f32 to vector<16x1xf32>
    %11 = arith.divf %9, %10 : vector<16x1xf32>
    %12 = vector.broadcast %11 : vector<16x1xf32> to vector<16x32xf32>
    %13 = arith.subf %5, %12 : vector<16x32xf32>
    %14 = arith.mulf %13, %13 : vector<16x32xf32>
    %cst_11 = arith.constant dense<0.000000e+00> : vector<16xf32>
    %15 = vector.multi_reduction <add>, %14, %cst_11 [1] : vector<16x32xf32> to vector<16xf32>
    %16 = vector.shape_cast %15 : vector<16xf32> to vector<16x1xf32>
    %cst_12 = arith.constant 3.200000e+01 : f32
    %17 = vector.broadcast %cst_12 : f32 to vector<16x1xf32>
    %18 = arith.divf %16, %17 : vector<16x1xf32>
    %19 = vector.broadcast %11 : vector<16x1xf32> to vector<16x32xf32>
    %20 = arith.subf %5, %19 : vector<16x32xf32>
    %cst_13 = arith.constant 9.99999974E-6 : f32
    %21 = vector.broadcast %cst_13 : f32 to vector<16x1xf32>
    %22 = arith.addf %18, %21 : vector<16x1xf32>
    %23 = math.rsqrt %22 : vector<16x1xf32>
    %24 = vector.broadcast %23 : vector<16x1xf32> to vector<16x32xf32>
    %25 = arith.mulf %20, %24 : vector<16x32xf32>
    %26 = vector.broadcast %6 : vector<1x32xf32> to vector<16x32xf32>
    %27 = arith.mulf %25, %26 : vector<16x32xf32>
    %28 = vector.broadcast %7 : vector<1x32xf32> to vector<16x32xf32>
    %29 = arith.addf %27, %28 : vector<16x32xf32>
    %cst_14 = arith.constant 0.000000e+00 : f32
    %30 = vector.broadcast %cst_14 : f32 to vector<16x32xf32>
    %31 = arith.maximumf %29, %30 : vector<16x32xf32>
    %c0_15 = arith.constant 0 : index
    %c0_16 = arith.constant 0 : index
    %c0_17 = arith.constant 0 : index
    %32 = vector.load %arg5[%c0_15, %c0_16, %c0_17] : memref<2x1x32xf32, #tpu.memory_space<vmem>>, vector<1x1x32xf32>
    %33 = vector.shape_cast %32 : vector<1x1x32xf32> to vector<1x32xf32>
    %c0_18 = arith.constant 0 : index
    %c0_19 = arith.constant 0 : index
    %c0_20 = arith.constant 0 : index
    %34 = vector.load %arg6[%c0_18, %c0_19, %c0_20] : memref<2x1x32xf32, #tpu.memory_space<vmem>>, vector<1x1x32xf32>
    %35 = vector.shape_cast %34 : vector<1x1x32xf32> to vector<1x32xf32>
    %cst_21 = arith.constant dense<0.000000e+00> : vector<16xf32>
    %36 = vector.multi_reduction <add>, %31, %cst_21 [1] : vector<16x32xf32> to vector<16xf32>
    %37 = vector.shape_cast %36 : vector<16xf32> to vector<16x1xf32>
    %cst_22 = arith.constant 3.200000e+01 : f32
    %38 = vector.broadcast %cst_22 : f32 to vector<16x1xf32>
    %39 = arith.divf %37, %38 : vector<16x1xf32>
    %40 = vector.broadcast %39 : vector<16x1xf32> to vector<16x32xf32>
    %41 = arith.subf %31, %40 : vector<16x32xf32>
    %42 = arith.mulf %41, %41 : vector<16x32xf32>
    %cst_23 = arith.constant dense<0.000000e+00> : vector<16xf32>
    %43 = vector.multi_reduction <add>, %42, %cst_23 [1] : vector<16x32xf32> to vector<16xf32>
    %44 = vector.shape_cast %43 : vector<16xf32> to vector<16x1xf32>
    %cst_24 = arith.constant 3.200000e+01 : f32
    %45 = vector.broadcast %cst_24 : f32 to vector<16x1xf32>
    %46 = arith.divf %44, %45 : vector<16x1xf32>
    %47 = vector.broadcast %39 : vector<16x1xf32> to vector<16x32xf32>
    %48 = arith.subf %31, %47 : vector<16x32xf32>
    %cst_25 = arith.constant 9.99999974E-6 : f32
    %49 = vector.broadcast %cst_25 : f32 to vector<16x1xf32>
    %50 = arith.addf %46, %49 : vector<16x1xf32>
    %51 = math.rsqrt %50 : vector<16x1xf32>
    %52 = vector.broadcast %51 : vector<16x1xf32> to vector<16x32xf32>
    %53 = arith.mulf %48, %52 : vector<16x32xf32>
    %54 = vector.broadcast %33 : vector<1x32xf32> to vector<16x32xf32>
    %55 = arith.mulf %53, %54 : vector<16x32xf32>
    %56 = vector.broadcast %35 : vector<1x32xf32> to vector<16x32xf32>
    %57 = arith.addf %55, %56 : vector<16x32xf32>
    %c0_26 = arith.constant 0 : index
    %c0_27 = arith.constant 0 : index
    %c0_28 = arith.constant 0 : index
    %58 = vector.load %arg7[%c0_26, %c0_27, %c0_28] : memref<2x32x32xf32, #tpu.memory_space<vmem>>, vector<1x32x32xf32>
    %59 = vector.shape_cast %58 : vector<1x32x32xf32> to vector<32x32xf32>
    %cst_29 = arith.constant dense<0.000000e+00> : vector<16x32xf32>
    %60 = tpu.matmul %57, %59, %cst_29 {dimension_numbers = #tpu.dot_dimension_numbers<[1], [0], [0], [1], [0, 0, 1, 1], [], []>} : vector<16x32xf32>, vector<32x32xf32>, vector<16x32xf32> -> vector<16x32xf32>
    %c0_30 = arith.constant 0 : index
    %c0_31 = arith.constant 0 : index
    %c0_32 = arith.constant 0 : index
    %61 = vector.load %arg8[%c0_30, %c0_31, %c0_32] : memref<2x1x32xf32, #tpu.memory_space<vmem>>, vector<1x1x32xf32>
    %62 = vector.shape_cast %61 : vector<1x1x32xf32> to vector<1x32xf32>
    %63 = vector.broadcast %62 : vector<1x32xf32> to vector<16x32xf32>
    %64 = arith.addf %60, %63 : vector<16x32xf32>
    %c0_33 = arith.constant 0 : index
    %c0_34 = arith.constant 0 : index
    %c0_35 = arith.constant 0 : index
    %65 = vector.load %arg9[%c0_33, %c0_34, %c0_35] : memref<2x32x32xf32, #tpu.memory_space<vmem>>, vector<1x32x32xf32>
    %66 = vector.shape_cast %65 : vector<1x32x32xf32> to vector<32x32xf32>
    %cst_36 = arith.constant dense<0.000000e+00> : vector<16x32xf32>
    %67 = tpu.matmul %57, %66, %cst_36 {dimension_numbers = #tpu.dot_dimension_numbers<[1], [0], [0], [1], [0, 0, 1, 1], [], []>} : vector<16x32xf32>, vector<32x32xf32>, vector<16x32xf32> -> vector<16x32xf32>
    %c0_37 = arith.constant 0 : index
    %c0_38 = arith.constant 0 : index
    %c0_39 = arith.constant 0 : index
    %68 = vector.load %arg10[%c0_37, %c0_38, %c0_39] : memref<2x1x32xf32, #tpu.memory_space<vmem>>, vector<1x1x32xf32>
    %69 = vector.shape_cast %68 : vector<1x1x32xf32> to vector<1x32xf32>
    %70 = vector.broadcast %69 : vector<1x32xf32> to vector<16x32xf32>
    %71 = arith.addf %67, %70 : vector<16x32xf32>
    %c0_40 = arith.constant 0 : index
    %c0_41 = arith.constant 0 : index
    %c0_42 = arith.constant 0 : index
    %72 = vector.load %arg11[%c0_40, %c0_41, %c0_42] : memref<2x32x32xf32, #tpu.memory_space<vmem>>, vector<1x32x32xf32>
    %73 = vector.shape_cast %72 : vector<1x32x32xf32> to vector<32x32xf32>
    %cst_43 = arith.constant dense<0.000000e+00> : vector<16x32xf32>
    %74 = tpu.matmul %57, %73, %cst_43 {dimension_numbers = #tpu.dot_dimension_numbers<[1], [0], [0], [1], [0, 0, 1, 1], [], []>} : vector<16x32xf32>, vector<32x32xf32>, vector<16x32xf32> -> vector<16x32xf32>
    %c0_44 = arith.constant 0 : index
    %c0_45 = arith.constant 0 : index
    %c0_46 = arith.constant 0 : index
    %75 = vector.load %arg12[%c0_44, %c0_45, %c0_46] : memref<2x1x32xf32, #tpu.memory_space<vmem>>, vector<1x1x32xf32>
    %76 = vector.shape_cast %75 : vector<1x1x32xf32> to vector<1x32xf32>
    %77 = vector.broadcast %76 : vector<1x32xf32> to vector<16x32xf32>
    %78 = arith.addf %74, %77 : vector<16x32xf32>
    %cst_47 = arith.constant 0.353553385 : f32
    %79 = vector.broadcast %cst_47 : f32 to vector<16x32xf32>
    %80 = arith.mulf %64, %79 : vector<16x32xf32>
    %81 = vector.shape_cast %80 : vector<16x32xf32> to vector<2x8x32xf32>
    %82 = vector.shape_cast %71 : vector<16x32xf32> to vector<2x8x32xf32>
    %83 = vector.shape_cast %78 : vector<16x32xf32> to vector<2x8x32xf32>
    %84 = vector.extract_strided_slice %81 {offsets = [0, 0, 0], sizes = [2, 8, 8], strides = [1, 1, 1]} : vector<2x8x32xf32> to vector<2x8x8xf32>
    %85 = vector.extract_strided_slice %82 {offsets = [0, 0, 0], sizes = [2, 8, 8], strides = [1, 1, 1]} : vector<2x8x32xf32> to vector<2x8x8xf32>
    %86 = vector.extract_strided_slice %83 {offsets = [0, 0, 0], sizes = [2, 8, 8], strides = [1, 1, 1]} : vector<2x8x32xf32> to vector<2x8x8xf32>
    "tpu.trace_start"() <{level = 10 : i32, message = "bqd,bkd->bqk"}> : () -> ()
    %cst_48 = arith.constant dense<0.000000e+00> : vector<2x8x8xf32>
    %87 = tpu.matmul %84, %85, %cst_48 {dimension_numbers = #tpu.dot_dimension_numbers<[2], [2], [1], [1], [0, 0, 0, 1, 1, 1], [0], [0]>} : vector<2x8x8xf32>, vector<2x8x8xf32>, vector<2x8x8xf32> -> vector<2x8x8xf32>
    "tpu.trace_stop"() : () -> ()
    %cst_49 = arith.constant dense<0xFF800000> : vector<2x8xf32>
    %88 = vector.multi_reduction <maximumf>, %87, %cst_49 [2] : vector<2x8x8xf32> to vector<2x8xf32>
    %89 = vector.shape_cast %88 : vector<2x8xf32> to vector<2x8x1xf32>
    %90 = vector.broadcast %89 : vector<2x8x1xf32> to vector<2x8x8xf32>
    %91 = arith.subf %87, %90 : vector<2x8x8xf32>
    %92 = math.exp %91 : vector<2x8x8xf32>
    %cst_50 = arith.constant dense<0.000000e+00> : vector<2x8xf32>
    %93 = vector.multi_reduction <add>, %92, %cst_50 [2] : vector<2x8x8xf32> to vector<2x8xf32>
    %94 = vector.shape_cast %93 : vector<2x8xf32> to vector<2x8x1xf32>
    %95 = tpu.reciprocal %94 {approx = true} : vector<2x8x1xf32> -> vector<2x8x1xf32>
    %96 = vector.broadcast %95 : vector<2x8x1xf32> to vector<2x8x8xf32>
    %97 = arith.mulf %92, %96 : vector<2x8x8xf32>
    "tpu.trace_start"() <{level = 10 : i32, message = "bqk,bkd->bqd"}> : () -> ()
    %cst_51 = arith.constant dense<0.000000e+00> : vector<2x8x8xf32>
    %98 = tpu.matmul %97, %86, %cst_51 {dimension_numbers = #tpu.dot_dimension_numbers<[2], [1], [1], [2], [0, 0, 0, 1, 1, 2], [0], [0]>} : vector<2x8x8xf32>, vector<2x8x8xf32>, vector<2x8x8xf32> -> vector<2x8x8xf32>
    "tpu.trace_stop"() : () -> ()
    %c0_52 = arith.constant 0 : index
    %c0_53 = arith.constant 0 : index
    %c0_54 = arith.constant 0 : index
    %99 = vector.load %arg26[%c0_52, %c0_53, %c0_54] : memref<2x8x32xf32, #tpu.memory_space<vmem>>, vector<2x8x8xf32>
    tpu.vector_store %arg26[%c0_52, %c0_53, %c0_54], %98 {strides = array<i32>} : memref<2x8x32xf32, #tpu.memory_space<vmem>>, vector<2x8x8xf32>,
    %100 = vector.extract_strided_slice %81 {offsets = [0, 0, 8], sizes = [2, 8, 8], strides = [1, 1, 1]} : vector<2x8x32xf32> to vector<2x8x8xf32>
    %101 = vector.extract_strided_slice %82 {offsets = [0, 0, 8], sizes = [2, 8, 8], strides = [1, 1, 1]} : vector<2x8x32xf32> to vector<2x8x8xf32>
    %102 = vector.extract_strided_slice %83 {offsets = [0, 0, 8], sizes = [2, 8, 8], strides = [1, 1, 1]} : vector<2x8x32xf32> to vector<2x8x8xf32>
    "tpu.trace_start"() <{level = 10 : i32, message = "bqd,bkd->bqk"}> : () -> ()
    %cst_55 = arith.constant dense<0.000000e+00> : vector<2x8x8xf32>
    %103 = tpu.matmul %100, %101, %cst_55 {dimension_numbers = #tpu.dot_dimension_numbers<[2], [2], [1], [1], [0, 0, 0, 1, 1, 1], [0], [0]>} : vector<2x8x8xf32>, vector<2x8x8xf32>, vector<2x8x8xf32> -> vector<2x8x8xf32>
    "tpu.trace_stop"() : () -> ()
    %cst_56 = arith.constant dense<0xFF800000> : vector<2x8xf32>
    %104 = vector.multi_reduction <maximumf>, %103, %cst_56 [2] : vector<2x8x8xf32> to vector<2x8xf32>
    %105 = vector.shape_cast %104 : vector<2x8xf32> to vector<2x8x1xf32>
    %106 = vector.broadcast %105 : vector<2x8x1xf32> to vector<2x8x8xf32>
    %107 = arith.subf %103, %106 : vector<2x8x8xf32>
    %108 = math.exp %107 : vector<2x8x8xf32>
    %cst_57 = arith.constant dense<0.000000e+00> : vector<2x8xf32>
    %109 = vector.multi_reduction <add>, %108, %cst_57 [2] : vector<2x8x8xf32> to vector<2x8xf32>
    %110 = vector.shape_cast %109 : vector<2x8xf32> to vector<2x8x1xf32>
    %111 = tpu.reciprocal %110 {approx = true} : vector<2x8x1xf32> -> vector<2x8x1xf32>
    %112 = vector.broadcast %111 : vector<2x8x1xf32> to vector<2x8x8xf32>
    %113 = arith.mulf %108, %112 : vector<2x8x8xf32>
    "tpu.trace_start"() <{level = 10 : i32, message = "bqk,bkd->bqd"}> : () -> ()
    %cst_58 = arith.constant dense<0.000000e+00> : vector<2x8x8xf32>
    %114 = tpu.matmul %113, %102, %cst_58 {dimension_numbers = #tpu.dot_dimension_numbers<[2], [1], [1], [2], [0, 0, 0, 1, 1, 2], [0], [0]>} : vector<2x8x8xf32>, vector<2x8x8xf32>, vector<2x8x8xf32> -> vector<2x8x8xf32>
    "tpu.trace_stop"() : () -> ()
    %c0_59 = arith.constant 0 : index
    %c0_60 = arith.constant 0 : index
    %c8 = arith.constant 8 : index
    %115 = vector.load %arg26[%c0_59, %c0_60, %c8] : memref<2x8x32xf32, #tpu.memory_space<vmem>>, vector<2x8x8xf32>
    tpu.vector_store %arg26[%c0_59, %c0_60, %c8], %114 {strides = array<i32>} : memref<2x8x32xf32, #tpu.memory_space<vmem>>, vector<2x8x8xf32>,
    %116 = vector.extract_strided_slice %81 {offsets = [0, 0, 16], sizes = [2, 8, 8], strides = [1, 1, 1]} : vector<2x8x32xf32> to vector<2x8x8xf32>
    %117 = vector.extract_strided_slice %82 {offsets = [0, 0, 16], sizes = [2, 8, 8], strides = [1, 1, 1]} : vector<2x8x32xf32> to vector<2x8x8xf32>
    %118 = vector.extract_strided_slice %83 {offsets = [0, 0, 16], sizes = [2, 8, 8], strides = [1, 1, 1]} : vector<2x8x32xf32> to vector<2x8x8xf32>
    "tpu.trace_start"() <{level = 10 : i32, message = "bqd,bkd->bqk"}> : () -> ()
    %cst_61 = arith.constant dense<0.000000e+00> : vector<2x8x8xf32>
    %119 = tpu.matmul %116, %117, %cst_61 {dimension_numbers = #tpu.dot_dimension_numbers<[2], [2], [1], [1], [0, 0, 0, 1, 1, 1], [0], [0]>} : vector<2x8x8xf32>, vector<2x8x8xf32>, vector<2x8x8xf32> -> vector<2x8x8xf32>
    "tpu.trace_stop"() : () -> ()
    %cst_62 = arith.constant dense<0xFF800000> : vector<2x8xf32>
    %120 = vector.multi_reduction <maximumf>, %119, %cst_62 [2] : vector<2x8x8xf32> to vector<2x8xf32>
    %121 = vector.shape_cast %120 : vector<2x8xf32> to vector<2x8x1xf32>
    %122 = vector.broadcast %121 : vector<2x8x1xf32> to vector<2x8x8xf32>
    %123 = arith.subf %119, %122 : vector<2x8x8xf32>
    %124 = math.exp %123 : vector<2x8x8xf32>
    %cst_63 = arith.constant dense<0.000000e+00> : vector<2x8xf32>
    %125 = vector.multi_reduction <add>, %124, %cst_63 [2] : vector<2x8x8xf32> to vector<2x8xf32>
    %126 = vector.shape_cast %125 : vector<2x8xf32> to vector<2x8x1xf32>
    %127 = tpu.reciprocal %126 {approx = true} : vector<2x8x1xf32> -> vector<2x8x1xf32>
    %128 = vector.broadcast %127 : vector<2x8x1xf32> to vector<2x8x8xf32>
    %129 = arith.mulf %124, %128 : vector<2x8x8xf32>
    "tpu.trace_start"() <{level = 10 : i32, message = "bqk,bkd->bqd"}> : () -> ()
    %cst_64 = arith.constant dense<0.000000e+00> : vector<2x8x8xf32>
    %130 = tpu.matmul %129, %118, %cst_64 {dimension_numbers = #tpu.dot_dimension_numbers<[2], [1], [1], [2], [0, 0, 0, 1, 1, 2], [0], [0]>} : vector<2x8x8xf32>, vector<2x8x8xf32>, vector<2x8x8xf32> -> vector<2x8x8xf32>
    "tpu.trace_stop"() : () -> ()
    %c0_65 = arith.constant 0 : index
    %c0_66 = arith.constant 0 : index
    %c16 = arith.constant 16 : index
    %131 = vector.load %arg26[%c0_65, %c0_66, %c16] : memref<2x8x32xf32, #tpu.memory_space<vmem>>, vector<2x8x8xf32>
    tpu.vector_store %arg26[%c0_65, %c0_66, %c16], %130 {strides = array<i32>} : memref<2x8x32xf32, #tpu.memory_space<vmem>>, vector<2x8x8xf32>,
    %132 = vector.extract_strided_slice %81 {offsets = [0, 0, 24], sizes = [2, 8, 8], strides = [1, 1, 1]} : vector<2x8x32xf32> to vector<2x8x8xf32>
    %133 = vector.extract_strided_slice %82 {offsets = [0, 0, 24], sizes = [2, 8, 8], strides = [1, 1, 1]} : vector<2x8x32xf32> to vector<2x8x8xf32>
    %134 = vector.extract_strided_slice %83 {offsets = [0, 0, 24], sizes = [2, 8, 8], strides = [1, 1, 1]} : vector<2x8x32xf32> to vector<2x8x8xf32>
    "tpu.trace_start"() <{level = 10 : i32, message = "bqd,bkd->bqk"}> : () -> ()
    %cst_67 = arith.constant dense<0.000000e+00> : vector<2x8x8xf32>
    %135 = tpu.matmul %132, %133, %cst_67 {dimension_numbers = #tpu.dot_dimension_numbers<[2], [2], [1], [1], [0, 0, 0, 1, 1, 1], [0], [0]>} : vector<2x8x8xf32>, vector<2x8x8xf32>, vector<2x8x8xf32> -> vector<2x8x8xf32>
    "tpu.trace_stop"() : () -> ()
    %cst_68 = arith.constant dense<0xFF800000> : vector<2x8xf32>
    %136 = vector.multi_reduction <maximumf>, %135, %cst_68 [2] : vector<2x8x8xf32> to vector<2x8xf32>
    %137 = vector.shape_cast %136 : vector<2x8xf32> to vector<2x8x1xf32>
    %138 = vector.broadcast %137 : vector<2x8x1xf32> to vector<2x8x8xf32>
    %139 = arith.subf %135, %138 : vector<2x8x8xf32>
    %140 = math.exp %139 : vector<2x8x8xf32>
    %cst_69 = arith.constant dense<0.000000e+00> : vector<2x8xf32>
    %141 = vector.multi_reduction <add>, %140, %cst_69 [2] : vector<2x8x8xf32> to vector<2x8xf32>
    %142 = vector.shape_cast %141 : vector<2x8xf32> to vector<2x8x1xf32>
    %143 = tpu.reciprocal %142 {approx = true} : vector<2x8x1xf32> -> vector<2x8x1xf32>
    %144 = vector.broadcast %143 : vector<2x8x1xf32> to vector<2x8x8xf32>
    %145 = arith.mulf %140, %144 : vector<2x8x8xf32>
    "tpu.trace_start"() <{level = 10 : i32, message = "bqk,bkd->bqd"}> : () -> ()
    %cst_70 = arith.constant dense<0.000000e+00> : vector<2x8x8xf32>
    %146 = tpu.matmul %145, %134, %cst_70 {dimension_numbers = #tpu.dot_dimension_numbers<[2], [1], [1], [2], [0, 0, 0, 1, 1, 2], [0], [0]>} : vector<2x8x8xf32>, vector<2x8x8xf32>, vector<2x8x8xf32> -> vector<2x8x8xf32>
    "tpu.trace_stop"() : () -> ()
    %c0_71 = arith.constant 0 : index
    %c0_72 = arith.constant 0 : index
    %c24 = arith.constant 24 : index
    %147 = vector.load %arg26[%c0_71, %c0_72, %c24] : memref<2x8x32xf32, #tpu.memory_space<vmem>>, vector<2x8x8xf32>
    tpu.vector_store %arg26[%c0_71, %c0_72, %c24], %146 {strides = array<i32>} : memref<2x8x32xf32, #tpu.memory_space<vmem>>, vector<2x8x8xf32>,
    %c0_73 = arith.constant 0 : index
    %c0_74 = arith.constant 0 : index
    %c0_75 = arith.constant 0 : index
    %148 = vector.load %arg26[%c0_73, %c0_74, %c0_75] : memref<2x8x32xf32, #tpu.memory_space<vmem>>, vector<2x8x32xf32>
    %149 = vector.shape_cast %148 : vector<2x8x32xf32> to vector<16x32xf32>
    %c0_76 = arith.constant 0 : index
    %c0_77 = arith.constant 0 : index
    %c0_78 = arith.constant 0 : index
    %150 = vector.load %arg13[%c0_76, %c0_77, %c0_78] : memref<2x32x32xf32, #tpu.memory_space<vmem>>, vector<1x32x32xf32>
    %151 = vector.shape_cast %150 : vector<1x32x32xf32> to vector<32x32xf32>
    %cst_79 = arith.constant dense<0.000000e+00> : vector<16x32xf32>
    %152 = tpu.matmul %149, %151, %cst_79 {dimension_numbers = #tpu.dot_dimension_numbers<[1], [0], [0], [1], [0, 0, 1, 1], [], []>} : vector<16x32xf32>, vector<32x32xf32>, vector<16x32xf32> -> vector<16x32xf32>
    %153 = arith.addf %31, %152 : vector<16x32xf32>
    %c0_80 = arith.constant 0 : index
    %c0_81 = arith.constant 0 : index
    %c0_82 = arith.constant 0 : index
    %154 = vector.load %arg14[%c0_80, %c0_81, %c0_82] : memref<2x1x32xf32, #tpu.memory_space<vmem>>, vector<1x1x32xf32>
    %155 = vector.shape_cast %154 : vector<1x1x32xf32> to vector<1x32xf32>
    %156 = vector.broadcast %155 : vector<1x32xf32> to vector<16x32xf32>
    %157 = arith.addf %153, %156 : vector<16x32xf32>
    %c0_83 = arith.constant 0 : index
    %c0_84 = arith.constant 0 : index
    %c0_85 = arith.constant 0 : index
    %158 = vector.load %arg15[%c0_83, %c0_84, %c0_85] : memref<2x1x32xf32, #tpu.memory_space<vmem>>, vector<1x1x32xf32>
    %159 = vector.shape_cast %158 : vector<1x1x32xf32> to vector<1x32xf32>
    %c0_86 = arith.constant 0 : index
    %c0_87 = arith.constant 0 : index
    %c0_88 = arith.constant 0 : index
    %160 = vector.load %arg16[%c0_86, %c0_87, %c0_88] : memref<2x1x32xf32, #tpu.memory_space<vmem>>, vector<1x1x32xf32>
    %161 = vector.shape_cast %160 : vector<1x1x32xf32> to vector<1x32xf32>
    %cst_89 = arith.constant dense<0.000000e+00> : vector<16xf32>
    %162 = vector.multi_reduction <add>, %157, %cst_89 [1] : vector<16x32xf32> to vector<16xf32>
    %163 = vector.shape_cast %162 : vector<16xf32> to vector<16x1xf32>
    %cst_90 = arith.constant 3.200000e+01 : f32
    %164 = vector.broadcast %cst_90 : f32 to vector<16x1xf32>
    %165 = arith.divf %163, %164 : vector<16x1xf32>
    %166 = vector.broadcast %165 : vector<16x1xf32> to vector<16x32xf32>
    %167 = arith.subf %157, %166 : vector<16x32xf32>
    %168 = arith.mulf %167, %167 : vector<16x32xf32>
    %cst_91 = arith.constant dense<0.000000e+00> : vector<16xf32>
    %169 = vector.multi_reduction <add>, %168, %cst_91 [1] : vector<16x32xf32> to vector<16xf32>
    %170 = vector.shape_cast %169 : vector<16xf32> to vector<16x1xf32>
    %cst_92 = arith.constant 3.200000e+01 : f32
    %171 = vector.broadcast %cst_92 : f32 to vector<16x1xf32>
    %172 = arith.divf %170, %171 : vector<16x1xf32>
    %173 = vector.broadcast %165 : vector<16x1xf32> to vector<16x32xf32>
    %174 = arith.subf %157, %173 : vector<16x32xf32>
    %cst_93 = arith.constant 9.99999974E-6 : f32
    %175 = vector.broadcast %cst_93 : f32 to vector<16x1xf32>
    %176 = arith.addf %172, %175 : vector<16x1xf32>
    %177 = math.rsqrt %176 : vector<16x1xf32>
    %178 = vector.broadcast %177 : vector<16x1xf32> to vector<16x32xf32>
    %179 = arith.mulf %174, %178 : vector<16x32xf32>
    %180 = vector.broadcast %159 : vector<1x32xf32> to vector<16x32xf32>
    %181 = arith.mulf %179, %180 : vector<16x32xf32>
    %182 = vector.broadcast %161 : vector<1x32xf32> to vector<16x32xf32>
    %183 = arith.addf %181, %182 : vector<16x32xf32>
    %c0_94 = arith.constant 0 : index
    %c0_95 = arith.constant 0 : index
    %c0_96 = arith.constant 0 : index
    %184 = vector.load %arg17[%c0_94, %c0_95, %c0_96] : memref<2x32x64xf32, #tpu.memory_space<vmem>>, vector<1x32x64xf32>
    %185 = vector.shape_cast %184 : vector<1x32x64xf32> to vector<32x64xf32>
    %cst_97 = arith.constant dense<0.000000e+00> : vector<16x64xf32>
    %186 = tpu.matmul %183, %185, %cst_97 {dimension_numbers = #tpu.dot_dimension_numbers<[1], [0], [0], [1], [0, 0, 1, 1], [], []>} : vector<16x32xf32>, vector<32x64xf32>, vector<16x64xf32> -> vector<16x64xf32>
    %c0_98 = arith.constant 0 : index
    %c0_99 = arith.constant 0 : index
    %c0_100 = arith.constant 0 : index
    %187 = vector.load %arg18[%c0_98, %c0_99, %c0_100] : memref<2x1x64xf32, #tpu.memory_space<vmem>>, vector<1x1x64xf32>
    %188 = vector.shape_cast %187 : vector<1x1x64xf32> to vector<1x64xf32>
    %189 = vector.broadcast %188 : vector<1x64xf32> to vector<16x64xf32>
    %190 = arith.addf %186, %189 : vector<16x64xf32>
    %cst_101 = arith.constant 0.000000e+00 : f32
    %191 = vector.broadcast %cst_101 : f32 to vector<16x64xf32>
    %192 = arith.maximumf %190, %191 : vector<16x64xf32>
    %c0_102 = arith.constant 0 : index
    %c0_103 = arith.constant 0 : index
    %c0_104 = arith.constant 0 : index
    %193 = vector.load %arg19[%c0_102, %c0_103, %c0_104] : memref<2x64x32xf32, #tpu.memory_space<vmem>>, vector<1x64x32xf32>
    %194 = vector.shape_cast %193 : vector<1x64x32xf32> to vector<64x32xf32>
    %cst_105 = arith.constant dense<0.000000e+00> : vector<16x32xf32>
    %195 = tpu.matmul %192, %194, %cst_105 {dimension_numbers = #tpu.dot_dimension_numbers<[1], [0], [0], [1], [0, 0, 1, 1], [], []>} : vector<16x64xf32>, vector<64x32xf32>, vector<16x32xf32> -> vector<16x32xf32>
    %196 = arith.addf %157, %195 : vector<16x32xf32>
    %c0_106 = arith.constant 0 : index
    %c0_107 = arith.constant 0 : index
    %c0_108 = arith.constant 0 : index
    %197 = vector.load %arg20[%c0_106, %c0_107, %c0_108] : memref<2x1x32xf32, #tpu.memory_space<vmem>>, vector<1x1x32xf32>
    %198 = vector.shape_cast %197 : vector<1x1x32xf32> to vector<1x32xf32>
    %199 = vector.broadcast %198 : vector<1x32xf32> to vector<16x32xf32>
    %200 = arith.addf %196, %199 : vector<16x32xf32>
    %c1 = arith.constant 1 : index
    %c0_109 = arith.constant 0 : index
    %c0_110 = arith.constant 0 : index
    %201 = vector.load %arg5[%c1, %c0_109, %c0_110] : memref<2x1x32xf32, #tpu.memory_space<vmem>>, vector<1x1x32xf32>
    %202 = vector.shape_cast %201 : vector<1x1x32xf32> to vector<1x32xf32>
    %c1_111 = arith.constant 1 : index
    %c0_112 = arith.constant 0 : index
    %c0_113 = arith.constant 0 : index
    %203 = vector.load %arg6[%c1_111, %c0_112, %c0_113] : memref<2x1x32xf32, #tpu.memory_space<vmem>>, vector<1x1x32xf32>
    %204 = vector.shape_cast %203 : vector<1x1x32xf32> to vector<1x32xf32>
    %cst_114 = arith.constant dense<0.000000e+00> : vector<16xf32>
    %205 = vector.multi_reduction <add>, %200, %cst_114 [1] : vector<16x32xf32> to vector<16xf32>
    %206 = vector.shape_cast %205 : vector<16xf32> to vector<16x1xf32>
    %cst_115 = arith.constant 3.200000e+01 : f32
    %207 = vector.broadcast %cst_115 : f32 to vector<16x1xf32>
    %208 = arith.divf %206, %207 : vector<16x1xf32>
    %209 = vector.broadcast %208 : vector<16x1xf32> to vector<16x32xf32>
    %210 = arith.subf %200, %209 : vector<16x32xf32>
    %211 = arith.mulf %210, %210 : vector<16x32xf32>
    %cst_116 = arith.constant dense<0.000000e+00> : vector<16xf32>
    %212 = vector.multi_reduction <add>, %211, %cst_116 [1] : vector<16x32xf32> to vector<16xf32>
    %213 = vector.shape_cast %212 : vector<16xf32> to vector<16x1xf32>
    %cst_117 = arith.constant 3.200000e+01 : f32
    %214 = vector.broadcast %cst_117 : f32 to vector<16x1xf32>
    %215 = arith.divf %213, %214 : vector<16x1xf32>
    %216 = vector.broadcast %208 : vector<16x1xf32> to vector<16x32xf32>
    %217 = arith.subf %200, %216 : vector<16x32xf32>
    %cst_118 = arith.constant 9.99999974E-6 : f32
    %218 = vector.broadcast %cst_118 : f32 to vector<16x1xf32>
    %219 = arith.addf %215, %218 : vector<16x1xf32>
    %220 = math.rsqrt %219 : vector<16x1xf32>
    %221 = vector.broadcast %220 : vector<16x1xf32> to vector<16x32xf32>
    %222 = arith.mulf %217, %221 : vector<16x32xf32>
    %223 = vector.broadcast %202 : vector<1x32xf32> to vector<16x32xf32>
    %224 = arith.mulf %222, %223 : vector<16x32xf32>
    %225 = vector.broadcast %204 : vector<1x32xf32> to vector<16x32xf32>
    %226 = arith.addf %224, %225 : vector<16x32xf32>
    %c1_119 = arith.constant 1 : index
    %c0_120 = arith.constant 0 : index
    %c0_121 = arith.constant 0 : index
    %227 = vector.load %arg7[%c1_119, %c0_120, %c0_121] : memref<2x32x32xf32, #tpu.memory_space<vmem>>, vector<1x32x32xf32>
    %228 = vector.shape_cast %227 : vector<1x32x32xf32> to vector<32x32xf32>
    %cst_122 = arith.constant dense<0.000000e+00> : vector<16x32xf32>
    %229 = tpu.matmul %226, %228, %cst_122 {dimension_numbers = #tpu.dot_dimension_numbers<[1], [0], [0], [1], [0, 0, 1, 1], [], []>} : vector<16x32xf32>, vector<32x32xf32>, vector<16x32xf32> -> vector<16x32xf32>
    %c1_123 = arith.constant 1 : index
    %c0_124 = arith.constant 0 : index
    %c0_125 = arith.constant 0 : index
    %230 = vector.load %arg8[%c1_123, %c0_124, %c0_125] : memref<2x1x32xf32, #tpu.memory_space<vmem>>, vector<1x1x32xf32>
    %231 = vector.shape_cast %230 : vector<1x1x32xf32> to vector<1x32xf32>
    %232 = vector.broadcast %231 : vector<1x32xf32> to vector<16x32xf32>
    %233 = arith.addf %229, %232 : vector<16x32xf32>
    %c1_126 = arith.constant 1 : index
    %c0_127 = arith.constant 0 : index
    %c0_128 = arith.constant 0 : index
    %234 = vector.load %arg9[%c1_126, %c0_127, %c0_128] : memref<2x32x32xf32, #tpu.memory_space<vmem>>, vector<1x32x32xf32>
    %235 = vector.shape_cast %234 : vector<1x32x32xf32> to vector<32x32xf32>
    %cst_129 = arith.constant dense<0.000000e+00> : vector<16x32xf32>
    %236 = tpu.matmul %226, %235, %cst_129 {dimension_numbers = #tpu.dot_dimension_numbers<[1], [0], [0], [1], [0, 0, 1, 1], [], []>} : vector<16x32xf32>, vector<32x32xf32>, vector<16x32xf32> -> vector<16x32xf32>
    %c1_130 = arith.constant 1 : index
    %c0_131 = arith.constant 0 : index
    %c0_132 = arith.constant 0 : index
    %237 = vector.load %arg10[%c1_130, %c0_131, %c0_132] : memref<2x1x32xf32, #tpu.memory_space<vmem>>, vector<1x1x32xf32>
    %238 = vector.shape_cast %237 : vector<1x1x32xf32> to vector<1x32xf32>
    %239 = vector.broadcast %238 : vector<1x32xf32> to vector<16x32xf32>
    %240 = arith.addf %236, %239 : vector<16x32xf32>
    %c1_133 = arith.constant 1 : index
    %c0_134 = arith.constant 0 : index
    %c0_135 = arith.constant 0 : index
    %241 = vector.load %arg11[%c1_133, %c0_134, %c0_135] : memref<2x32x32xf32, #tpu.memory_space<vmem>>, vector<1x32x32xf32>
    %242 = vector.shape_cast %241 : vector<1x32x32xf32> to vector<32x32xf32>
    %cst_136 = arith.constant dense<0.000000e+00> : vector<16x32xf32>
    %243 = tpu.matmul %226, %242, %cst_136 {dimension_numbers = #tpu.dot_dimension_numbers<[1], [0], [0], [1], [0, 0, 1, 1], [], []>} : vector<16x32xf32>, vector<32x32xf32>, vector<16x32xf32> -> vector<16x32xf32>
    %c1_137 = arith.constant 1 : index
    %c0_138 = arith.constant 0 : index
    %c0_139 = arith.constant 0 : index
    %244 = vector.load %arg12[%c1_137, %c0_138, %c0_139] : memref<2x1x32xf32, #tpu.memory_space<vmem>>, vector<1x1x32xf32>
    %245 = vector.shape_cast %244 : vector<1x1x32xf32> to vector<1x32xf32>
    %246 = vector.broadcast %245 : vector<1x32xf32> to vector<16x32xf32>
    %247 = arith.addf %243, %246 : vector<16x32xf32>
    %cst_140 = arith.constant 0.353553385 : f32
    %248 = vector.broadcast %cst_140 : f32 to vector<16x32xf32>
    %249 = arith.mulf %233, %248 : vector<16x32xf32>
    %250 = vector.shape_cast %249 : vector<16x32xf32> to vector<2x8x32xf32>
    %251 = vector.shape_cast %240 : vector<16x32xf32> to vector<2x8x32xf32>
    %252 = vector.shape_cast %247 : vector<16x32xf32> to vector<2x8x32xf32>
    %253 = vector.extract_strided_slice %250 {offsets = [0, 0, 0], sizes = [2, 8, 8], strides = [1, 1, 1]} : vector<2x8x32xf32> to vector<2x8x8xf32>
    %254 = vector.extract_strided_slice %251 {offsets = [0, 0, 0], sizes = [2, 8, 8], strides = [1, 1, 1]} : vector<2x8x32xf32> to vector<2x8x8xf32>
    %255 = vector.extract_strided_slice %252 {offsets = [0, 0, 0], sizes = [2, 8, 8], strides = [1, 1, 1]} : vector<2x8x32xf32> to vector<2x8x8xf32>
    "tpu.trace_start"() <{level = 10 : i32, message = "bqd,bkd->bqk"}> : () -> ()
    %cst_141 = arith.constant dense<0.000000e+00> : vector<2x8x8xf32>
    %256 = tpu.matmul %253, %254, %cst_141 {dimension_numbers = #tpu.dot_dimension_numbers<[2], [2], [1], [1], [0, 0, 0, 1, 1, 1], [0], [0]>} : vector<2x8x8xf32>, vector<2x8x8xf32>, vector<2x8x8xf32> -> vector<2x8x8xf32>
    "tpu.trace_stop"() : () -> ()
    %cst_142 = arith.constant dense<0xFF800000> : vector<2x8xf32>
    %257 = vector.multi_reduction <maximumf>, %256, %cst_142 [2] : vector<2x8x8xf32> to vector<2x8xf32>
    %258 = vector.shape_cast %257 : vector<2x8xf32> to vector<2x8x1xf32>
    %259 = vector.broadcast %258 : vector<2x8x1xf32> to vector<2x8x8xf32>
    %260 = arith.subf %256, %259 : vector<2x8x8xf32>
    %261 = math.exp %260 : vector<2x8x8xf32>
    %cst_143 = arith.constant dense<0.000000e+00> : vector<2x8xf32>
    %262 = vector.multi_reduction <add>, %261, %cst_143 [2] : vector<2x8x8xf32> to vector<2x8xf32>
    %263 = vector.shape_cast %262 : vector<2x8xf32> to vector<2x8x1xf32>
    %264 = tpu.reciprocal %263 {approx = true} : vector<2x8x1xf32> -> vector<2x8x1xf32>
    %265 = vector.broadcast %264 : vector<2x8x1xf32> to vector<2x8x8xf32>
    %266 = arith.mulf %261, %265 : vector<2x8x8xf32>
    "tpu.trace_start"() <{level = 10 : i32, message = "bqk,bkd->bqd"}> : () -> ()
    %cst_144 = arith.constant dense<0.000000e+00> : vector<2x8x8xf32>
    %267 = tpu.matmul %266, %255, %cst_144 {dimension_numbers = #tpu.dot_dimension_numbers<[2], [1], [1], [2], [0, 0, 0, 1, 1, 2], [0], [0]>} : vector<2x8x8xf32>, vector<2x8x8xf32>, vector<2x8x8xf32> -> vector<2x8x8xf32>
    "tpu.trace_stop"() : () -> ()
    %c0_145 = arith.constant 0 : index
    %c0_146 = arith.constant 0 : index
    %c0_147 = arith.constant 0 : index
    %268 = vector.load %arg26[%c0_145, %c0_146, %c0_147] : memref<2x8x32xf32, #tpu.memory_space<vmem>>, vector<2x8x8xf32>
    tpu.vector_store %arg26[%c0_145, %c0_146, %c0_147], %267 {strides = array<i32>} : memref<2x8x32xf32, #tpu.memory_space<vmem>>, vector<2x8x8xf32>,
    %269 = vector.extract_strided_slice %250 {offsets = [0, 0, 8], sizes = [2, 8, 8], strides = [1, 1, 1]} : vector<2x8x32xf32> to vector<2x8x8xf32>
    %270 = vector.extract_strided_slice %251 {offsets = [0, 0, 8], sizes = [2, 8, 8], strides = [1, 1, 1]} : vector<2x8x32xf32> to vector<2x8x8xf32>
    %271 = vector.extract_strided_slice %252 {offsets = [0, 0, 8], sizes = [2, 8, 8], strides = [1, 1, 1]} : vector<2x8x32xf32> to vector<2x8x8xf32>
    "tpu.trace_start"() <{level = 10 : i32, message = "bqd,bkd->bqk"}> : () -> ()
    %cst_148 = arith.constant dense<0.000000e+00> : vector<2x8x8xf32>
    %272 = tpu.matmul %269, %270, %cst_148 {dimension_numbers = #tpu.dot_dimension_numbers<[2], [2], [1], [1], [0, 0, 0, 1, 1, 1], [0], [0]>} : vector<2x8x8xf32>, vector<2x8x8xf32>, vector<2x8x8xf32> -> vector<2x8x8xf32>
    "tpu.trace_stop"() : () -> ()
    %cst_149 = arith.constant dense<0xFF800000> : vector<2x8xf32>
    %273 = vector.multi_reduction <maximumf>, %272, %cst_149 [2] : vector<2x8x8xf32> to vector<2x8xf32>
    %274 = vector.shape_cast %273 : vector<2x8xf32> to vector<2x8x1xf32>
    %275 = vector.broadcast %274 : vector<2x8x1xf32> to vector<2x8x8xf32>
    %276 = arith.subf %272, %275 : vector<2x8x8xf32>
    %277 = math.exp %276 : vector<2x8x8xf32>
    %cst_150 = arith.constant dense<0.000000e+00> : vector<2x8xf32>
    %278 = vector.multi_reduction <add>, %277, %cst_150 [2] : vector<2x8x8xf32> to vector<2x8xf32>
    %279 = vector.shape_cast %278 : vector<2x8xf32> to vector<2x8x1xf32>
    %280 = tpu.reciprocal %279 {approx = true} : vector<2x8x1xf32> -> vector<2x8x1xf32>
    %281 = vector.broadcast %280 : vector<2x8x1xf32> to vector<2x8x8xf32>
    %282 = arith.mulf %277, %281 : vector<2x8x8xf32>
    "tpu.trace_start"() <{level = 10 : i32, message = "bqk,bkd->bqd"}> : () -> ()
    %cst_151 = arith.constant dense<0.000000e+00> : vector<2x8x8xf32>
    %283 = tpu.matmul %282, %271, %cst_151 {dimension_numbers = #tpu.dot_dimension_numbers<[2], [1], [1], [2], [0, 0, 0, 1, 1, 2], [0], [0]>} : vector<2x8x8xf32>, vector<2x8x8xf32>, vector<2x8x8xf32> -> vector<2x8x8xf32>
    "tpu.trace_stop"() : () -> ()
    %c0_152 = arith.constant 0 : index
    %c0_153 = arith.constant 0 : index
    %c8_154 = arith.constant 8 : index
    %284 = vector.load %arg26[%c0_152, %c0_153, %c8_154] : memref<2x8x32xf32, #tpu.memory_space<vmem>>, vector<2x8x8xf32>
    tpu.vector_store %arg26[%c0_152, %c0_153, %c8_154], %283 {strides = array<i32>} : memref<2x8x32xf32, #tpu.memory_space<vmem>>, vector<2x8x8xf32>,
    %285 = vector.extract_strided_slice %250 {offsets = [0, 0, 16], sizes = [2, 8, 8], strides = [1, 1, 1]} : vector<2x8x32xf32> to vector<2x8x8xf32>
    %286 = vector.extract_strided_slice %251 {offsets = [0, 0, 16], sizes = [2, 8, 8], strides = [1, 1, 1]} : vector<2x8x32xf32> to vector<2x8x8xf32>
    %287 = vector.extract_strided_slice %252 {offsets = [0, 0, 16], sizes = [2, 8, 8], strides = [1, 1, 1]} : vector<2x8x32xf32> to vector<2x8x8xf32>
    "tpu.trace_start"() <{level = 10 : i32, message = "bqd,bkd->bqk"}> : () -> ()
    %cst_155 = arith.constant dense<0.000000e+00> : vector<2x8x8xf32>
    %288 = tpu.matmul %285, %286, %cst_155 {dimension_numbers = #tpu.dot_dimension_numbers<[2], [2], [1], [1], [0, 0, 0, 1, 1, 1], [0], [0]>} : vector<2x8x8xf32>, vector<2x8x8xf32>, vector<2x8x8xf32> -> vector<2x8x8xf32>
    "tpu.trace_stop"() : () -> ()
    %cst_156 = arith.constant dense<0xFF800000> : vector<2x8xf32>
    %289 = vector.multi_reduction <maximumf>, %288, %cst_156 [2] : vector<2x8x8xf32> to vector<2x8xf32>
    %290 = vector.shape_cast %289 : vector<2x8xf32> to vector<2x8x1xf32>
    %291 = vector.broadcast %290 : vector<2x8x1xf32> to vector<2x8x8xf32>
    %292 = arith.subf %288, %291 : vector<2x8x8xf32>
    %293 = math.exp %292 : vector<2x8x8xf32>
    %cst_157 = arith.constant dense<0.000000e+00> : vector<2x8xf32>
    %294 = vector.multi_reduction <add>, %293, %cst_157 [2] : vector<2x8x8xf32> to vector<2x8xf32>
    %295 = vector.shape_cast %294 : vector<2x8xf32> to vector<2x8x1xf32>
    %296 = tpu.reciprocal %295 {approx = true} : vector<2x8x1xf32> -> vector<2x8x1xf32>
    %297 = vector.broadcast %296 : vector<2x8x1xf32> to vector<2x8x8xf32>
    %298 = arith.mulf %293, %297 : vector<2x8x8xf32>
    "tpu.trace_start"() <{level = 10 : i32, message = "bqk,bkd->bqd"}> : () -> ()
    %cst_158 = arith.constant dense<0.000000e+00> : vector<2x8x8xf32>
    %299 = tpu.matmul %298, %287, %cst_158 {dimension_numbers = #tpu.dot_dimension_numbers<[2], [1], [1], [2], [0, 0, 0, 1, 1, 2], [0], [0]>} : vector<2x8x8xf32>, vector<2x8x8xf32>, vector<2x8x8xf32> -> vector<2x8x8xf32>
    "tpu.trace_stop"() : () -> ()
    %c0_159 = arith.constant 0 : index
    %c0_160 = arith.constant 0 : index
    %c16_161 = arith.constant 16 : index
    %300 = vector.load %arg26[%c0_159, %c0_160, %c16_161] : memref<2x8x32xf32, #tpu.memory_space<vmem>>, vector<2x8x8xf32>
    tpu.vector_store %arg26[%c0_159, %c0_160, %c16_161], %299 {strides = array<i32>} : memref<2x8x32xf32, #tpu.memory_space<vmem>>, vector<2x8x8xf32>,
    %301 = vector.extract_strided_slice %250 {offsets = [0, 0, 24], sizes = [2, 8, 8], strides = [1, 1, 1]} : vector<2x8x32xf32> to vector<2x8x8xf32>
    %302 = vector.extract_strided_slice %251 {offsets = [0, 0, 24], sizes = [2, 8, 8], strides = [1, 1, 1]} : vector<2x8x32xf32> to vector<2x8x8xf32>
    %303 = vector.extract_strided_slice %252 {offsets = [0, 0, 24], sizes = [2, 8, 8], strides = [1, 1, 1]} : vector<2x8x32xf32> to vector<2x8x8xf32>
    "tpu.trace_start"() <{level = 10 : i32, message = "bqd,bkd->bqk"}> : () -> ()
    %cst_162 = arith.constant dense<0.000000e+00> : vector<2x8x8xf32>
    %304 = tpu.matmul %301, %302, %cst_162 {dimension_numbers = #tpu.dot_dimension_numbers<[2], [2], [1], [1], [0, 0, 0, 1, 1, 1], [0], [0]>} : vector<2x8x8xf32>, vector<2x8x8xf32>, vector<2x8x8xf32> -> vector<2x8x8xf32>
    "tpu.trace_stop"() : () -> ()
    %cst_163 = arith.constant dense<0xFF800000> : vector<2x8xf32>
    %305 = vector.multi_reduction <maximumf>, %304, %cst_163 [2] : vector<2x8x8xf32> to vector<2x8xf32>
    %306 = vector.shape_cast %305 : vector<2x8xf32> to vector<2x8x1xf32>
    %307 = vector.broadcast %306 : vector<2x8x1xf32> to vector<2x8x8xf32>
    %308 = arith.subf %304, %307 : vector<2x8x8xf32>
    %309 = math.exp %308 : vector<2x8x8xf32>
    %cst_164 = arith.constant dense<0.000000e+00> : vector<2x8xf32>
    %310 = vector.multi_reduction <add>, %309, %cst_164 [2] : vector<2x8x8xf32> to vector<2x8xf32>
    %311 = vector.shape_cast %310 : vector<2x8xf32> to vector<2x8x1xf32>
    %312 = tpu.reciprocal %311 {approx = true} : vector<2x8x1xf32> -> vector<2x8x1xf32>
    %313 = vector.broadcast %312 : vector<2x8x1xf32> to vector<2x8x8xf32>
    %314 = arith.mulf %309, %313 : vector<2x8x8xf32>
    "tpu.trace_start"() <{level = 10 : i32, message = "bqk,bkd->bqd"}> : () -> ()
    %cst_165 = arith.constant dense<0.000000e+00> : vector<2x8x8xf32>
    %315 = tpu.matmul %314, %303, %cst_165 {dimension_numbers = #tpu.dot_dimension_numbers<[2], [1], [1], [2], [0, 0, 0, 1, 1, 2], [0], [0]>} : vector<2x8x8xf32>, vector<2x8x8xf32>, vector<2x8x8xf32> -> vector<2x8x8xf32>
    "tpu.trace_stop"() : () -> ()
    %c0_166 = arith.constant 0 : index
    %c0_167 = arith.constant 0 : index
    %c24_168 = arith.constant 24 : index
    %316 = vector.load %arg26[%c0_166, %c0_167, %c24_168] : memref<2x8x32xf32, #tpu.memory_space<vmem>>, vector<2x8x8xf32>
    tpu.vector_store %arg26[%c0_166, %c0_167, %c24_168], %315 {strides = array<i32>} : memref<2x8x32xf32, #tpu.memory_space<vmem>>, vector<2x8x8xf32>,
    %c0_169 = arith.constant 0 : index
    %c0_170 = arith.constant 0 : index
    %c0_171 = arith.constant 0 : index
    %317 = vector.load %arg26[%c0_169, %c0_170, %c0_171] : memref<2x8x32xf32, #tpu.memory_space<vmem>>, vector<2x8x32xf32>
    %318 = vector.shape_cast %317 : vector<2x8x32xf32> to vector<16x32xf32>
    %c1_172 = arith.constant 1 : index
    %c0_173 = arith.constant 0 : index
    %c0_174 = arith.constant 0 : index
    %319 = vector.load %arg13[%c1_172, %c0_173, %c0_174] : memref<2x32x32xf32, #tpu.memory_space<vmem>>, vector<1x32x32xf32>
    %320 = vector.shape_cast %319 : vector<1x32x32xf32> to vector<32x32xf32>
    %cst_175 = arith.constant dense<0.000000e+00> : vector<16x32xf32>
    %321 = tpu.matmul %318, %320, %cst_175 {dimension_numbers = #tpu.dot_dimension_numbers<[1], [0], [0], [1], [0, 0, 1, 1], [], []>} : vector<16x32xf32>, vector<32x32xf32>, vector<16x32xf32> -> vector<16x32xf32>
    %322 = arith.addf %200, %321 : vector<16x32xf32>
    %c1_176 = arith.constant 1 : index
    %c0_177 = arith.constant 0 : index
    %c0_178 = arith.constant 0 : index
    %323 = vector.load %arg14[%c1_176, %c0_177, %c0_178] : memref<2x1x32xf32, #tpu.memory_space<vmem>>, vector<1x1x32xf32>
    %324 = vector.shape_cast %323 : vector<1x1x32xf32> to vector<1x32xf32>
    %325 = vector.broadcast %324 : vector<1x32xf32> to vector<16x32xf32>
    %326 = arith.addf %322, %325 : vector<16x32xf32>
    %c1_179 = arith.constant 1 : index
    %c0_180 = arith.constant 0 : index
    %c0_181 = arith.constant 0 : index
    %327 = vector.load %arg15[%c1_179, %c0_180, %c0_181] : memref<2x1x32xf32, #tpu.memory_space<vmem>>, vector<1x1x32xf32>
    %328 = vector.shape_cast %327 : vector<1x1x32xf32> to vector<1x32xf32>
    %c1_182 = arith.constant 1 : index
    %c0_183 = arith.constant 0 : index
    %c0_184 = arith.constant 0 : index
    %329 = vector.load %arg16[%c1_182, %c0_183, %c0_184] : memref<2x1x32xf32, #tpu.memory_space<vmem>>, vector<1x1x32xf32>
    %330 = vector.shape_cast %329 : vector<1x1x32xf32> to vector<1x32xf32>
    %cst_185 = arith.constant dense<0.000000e+00> : vector<16xf32>
    %331 = vector.multi_reduction <add>, %326, %cst_185 [1] : vector<16x32xf32> to vector<16xf32>
    %332 = vector.shape_cast %331 : vector<16xf32> to vector<16x1xf32>
    %cst_186 = arith.constant 3.200000e+01 : f32
    %333 = vector.broadcast %cst_186 : f32 to vector<16x1xf32>
    %334 = arith.divf %332, %333 : vector<16x1xf32>
    %335 = vector.broadcast %334 : vector<16x1xf32> to vector<16x32xf32>
    %336 = arith.subf %326, %335 : vector<16x32xf32>
    %337 = arith.mulf %336, %336 : vector<16x32xf32>
    %cst_187 = arith.constant dense<0.000000e+00> : vector<16xf32>
    %338 = vector.multi_reduction <add>, %337, %cst_187 [1] : vector<16x32xf32> to vector<16xf32>
    %339 = vector.shape_cast %338 : vector<16xf32> to vector<16x1xf32>
    %cst_188 = arith.constant 3.200000e+01 : f32
    %340 = vector.broadcast %cst_188 : f32 to vector<16x1xf32>
    %341 = arith.divf %339, %340 : vector<16x1xf32>
    %342 = vector.broadcast %334 : vector<16x1xf32> to vector<16x32xf32>
    %343 = arith.subf %326, %342 : vector<16x32xf32>
    %cst_189 = arith.constant 9.99999974E-6 : f32
    %344 = vector.broadcast %cst_189 : f32 to vector<16x1xf32>
    %345 = arith.addf %341, %344 : vector<16x1xf32>
    %346 = math.rsqrt %345 : vector<16x1xf32>
    %347 = vector.broadcast %346 : vector<16x1xf32> to vector<16x32xf32>
    %348 = arith.mulf %343, %347 : vector<16x32xf32>
    %349 = vector.broadcast %328 : vector<1x32xf32> to vector<16x32xf32>
    %350 = arith.mulf %348, %349 : vector<16x32xf32>
    %351 = vector.broadcast %330 : vector<1x32xf32> to vector<16x32xf32>
    %352 = arith.addf %350, %351 : vector<16x32xf32>
    %c1_190 = arith.constant 1 : index
    %c0_191 = arith.constant 0 : index
    %c0_192 = arith.constant 0 : index
    %353 = vector.load %arg17[%c1_190, %c0_191, %c0_192] : memref<2x32x64xf32, #tpu.memory_space<vmem>>, vector<1x32x64xf32>
    %354 = vector.shape_cast %353 : vector<1x32x64xf32> to vector<32x64xf32>
    %cst_193 = arith.constant dense<0.000000e+00> : vector<16x64xf32>
    %355 = tpu.matmul %352, %354, %cst_193 {dimension_numbers = #tpu.dot_dimension_numbers<[1], [0], [0], [1], [0, 0, 1, 1], [], []>} : vector<16x32xf32>, vector<32x64xf32>, vector<16x64xf32> -> vector<16x64xf32>
    %c1_194 = arith.constant 1 : index
    %c0_195 = arith.constant 0 : index
    %c0_196 = arith.constant 0 : index
    %356 = vector.load %arg18[%c1_194, %c0_195, %c0_196] : memref<2x1x64xf32, #tpu.memory_space<vmem>>, vector<1x1x64xf32>
    %357 = vector.shape_cast %356 : vector<1x1x64xf32> to vector<1x64xf32>
    %358 = vector.broadcast %357 : vector<1x64xf32> to vector<16x64xf32>
    %359 = arith.addf %355, %358 : vector<16x64xf32>
    %cst_197 = arith.constant 0.000000e+00 : f32
    %360 = vector.broadcast %cst_197 : f32 to vector<16x64xf32>
    %361 = arith.maximumf %359, %360 : vector<16x64xf32>
    %c1_198 = arith.constant 1 : index
    %c0_199 = arith.constant 0 : index
    %c0_200 = arith.constant 0 : index
    %362 = vector.load %arg19[%c1_198, %c0_199, %c0_200] : memref<2x64x32xf32, #tpu.memory_space<vmem>>, vector<1x64x32xf32>
    %363 = vector.shape_cast %362 : vector<1x64x32xf32> to vector<64x32xf32>
    %cst_201 = arith.constant dense<0.000000e+00> : vector<16x32xf32>
    %364 = tpu.matmul %361, %363, %cst_201 {dimension_numbers = #tpu.dot_dimension_numbers<[1], [0], [0], [1], [0, 0, 1, 1], [], []>} : vector<16x64xf32>, vector<64x32xf32>, vector<16x32xf32> -> vector<16x32xf32>
    %365 = arith.addf %326, %364 : vector<16x32xf32>
    %c1_202 = arith.constant 1 : index
    %c0_203 = arith.constant 0 : index
    %c0_204 = arith.constant 0 : index
    %366 = vector.load %arg20[%c1_202, %c0_203, %c0_204] : memref<2x1x32xf32, #tpu.memory_space<vmem>>, vector<1x1x32xf32>
    %367 = vector.shape_cast %366 : vector<1x1x32xf32> to vector<1x32xf32>
    %368 = vector.broadcast %367 : vector<1x32xf32> to vector<16x32xf32>
    %369 = arith.addf %365, %368 : vector<16x32xf32>
    %c0_205 = arith.constant 0 : index
    %c0_206 = arith.constant 0 : index
    %370 = vector.load %arg21[%c0_205, %c0_206] : memref<32x16xf32, #tpu.memory_space<vmem>>, vector<32x16xf32>
    %cst_207 = arith.constant dense<0.000000e+00> : vector<16x16xf32>
    %371 = tpu.matmul %369, %370, %cst_207 {dimension_numbers = #tpu.dot_dimension_numbers<[1], [0], [0], [1], [0, 0, 1, 1], [], []>} : vector<16x32xf32>, vector<32x16xf32>, vector<16x16xf32> -> vector<16x16xf32>
    %c0_208 = arith.constant 0 : index
    %c0_209 = arith.constant 0 : index
    %372 = vector.load %arg22[%c0_208, %c0_209] : memref<1x16xf32, #tpu.memory_space<vmem>>, vector<1x16xf32>
    %373 = vector.broadcast %372 : vector<1x16xf32> to vector<16x16xf32>
    %374 = arith.addf %371, %373 : vector<16x16xf32>
    %c0_210 = arith.constant 0 : index
    %c0_211 = arith.constant 0 : index
    %375 = vector.load %arg23[%c0_210, %c0_211] : memref<1x16xf32, #tpu.memory_space<vmem>>, vector<1x16xf32>
    %c0_212 = arith.constant 0 : index
    %c0_213 = arith.constant 0 : index
    %376 = vector.load %arg24[%c0_212, %c0_213] : memref<1x16xf32, #tpu.memory_space<vmem>>, vector<1x16xf32>
    %cst_214 = arith.constant dense<0.000000e+00> : vector<16xf32>
    %377 = vector.multi_reduction <add>, %374, %cst_214 [1] : vector<16x16xf32> to vector<16xf32>
    %378 = vector.shape_cast %377 : vector<16xf32> to vector<16x1xf32>
    %cst_215 = arith.constant 1.600000e+01 : f32
    %379 = vector.broadcast %cst_215 : f32 to vector<16x1xf32>
    %380 = arith.divf %378, %379 : vector<16x1xf32>
    %381 = vector.broadcast %380 : vector<16x1xf32> to vector<16x16xf32>
    %382 = arith.subf %374, %381 : vector<16x16xf32>
    %383 = arith.mulf %382, %382 : vector<16x16xf32>
    %cst_216 = arith.constant dense<0.000000e+00> : vector<16xf32>
    %384 = vector.multi_reduction <add>, %383, %cst_216 [1] : vector<16x16xf32> to vector<16xf32>
    %385 = vector.shape_cast %384 : vector<16xf32> to vector<16x1xf32>
    %cst_217 = arith.constant 1.600000e+01 : f32
    %386 = vector.broadcast %cst_217 : f32 to vector<16x1xf32>
    %387 = arith.divf %385, %386 : vector<16x1xf32>
    %388 = vector.broadcast %380 : vector<16x1xf32> to vector<16x16xf32>
    %389 = arith.subf %374, %388 : vector<16x16xf32>
    %cst_218 = arith.constant 9.99999974E-6 : f32
    %390 = vector.broadcast %cst_218 : f32 to vector<16x1xf32>
    %391 = arith.addf %387, %390 : vector<16x1xf32>
    %392 = math.rsqrt %391 : vector<16x1xf32>
    %393 = vector.broadcast %392 : vector<16x1xf32> to vector<16x16xf32>
    %394 = arith.mulf %389, %393 : vector<16x16xf32>
    %395 = vector.broadcast %375 : vector<1x16xf32> to vector<16x16xf32>
    %396 = arith.mulf %394, %395 : vector<16x16xf32>
    %397 = vector.broadcast %376 : vector<1x16xf32> to vector<16x16xf32>
    %398 = arith.addf %396, %397 : vector<16x16xf32>
    %cst_219 = arith.constant 0.000000e+00 : f32
    %399 = vector.broadcast %cst_219 : f32 to vector<16x16xf32>
    %400 = arith.maximumf %398, %399 : vector<16x16xf32>
    %c0_220 = arith.constant 0 : index
    %c0_221 = arith.constant 0 : index
    %401 = vector.load %arg25[%c0_220, %c0_221] : memref<16x16xf32, #tpu.memory_space<vmem>>, vector<16x16xf32>
    tpu.vector_store %arg25[%c0_220, %c0_221], %400 {strides = array<i32>} : memref<16x16xf32, #tpu.memory_space<vmem>>, vector<16x16xf32>,
    return
  }
}

</mosaic_0001>

<bundles_post_ra>
// kernel: tpu_custom_call.1
= control target key start
LH: loop header
LB: loop body
LE: loop exit
PB: predicated region body
PF: predicated region fallthrough
CT: control target
= control target key end

     0   :  { %s3727_s0 = inlined_call_operand.hbm [shape: f32[16,16], index: 0, kind: input, shape index: {}]   ;;  %s3728_s1 = inlined_call_operand.hbm [shape: f32[16,32], index: 1, kind: input, shape index: {}]   ;;  %s3729_s2 = inlined_call_operand.hbm [shape: f32[1,32], index: 2, kind: input, shape index: {}]   ;;  %s3730_s3 = inlined_call_operand.hbm [shape: f32[1,32], index: 3, kind: input, shape index: {}]   ;;  %s3731_s4 = inlined_call_operand.hbm [shape: f32[1,32], index: 4, kind: input, shape index: {}]   ;;  %s3732_s5 = inlined_call_operand.vmem [shape: f32[2,1,32], index: 5, kind: input, shape index: {}]   ;;  %s3733_s6 = inlined_call_operand.hbm [shape: f32[2,1,32], index: 6, kind: input, shape index: {}]   ;;  %s3734_s7 = inlined_call_operand.vmem [shape: f32[2,32,32], index: 7, kind: input, shape index: {}]   ;;  %s3735_s8 = inlined_call_operand.hbm [shape: f32[2,1,32], index: 8, kind: input, shape index: {}]   ;;  %s3736_s9 = inlined_call_operand.vmem [shape: f32[2,32,32], index: 9, kind: input, shape index: {}]   ;;  %s3737_s10 = inlined_call_operand.hbm [shape: f32[2,1,32], index: 10, kind: input, shape index: {}]   ;;  %s3738_s11 = inlined_call_operand.vmem [shape: f32[2,32,32], index: 11, kind: input, shape index: {}]   ;;  %s3739_s12 = inlined_call_operand.hbm [shape: f32[2,1,32], index: 12, kind: input, shape index: {}]   ;;  %s3740_s13 = inlined_call_operand.hbm [shape: f32[2,32,32], index: 13, kind: input, shape index: {}]   ;;  %s3741_s14 = inlined_call_operand.hbm [shape: f32[2,1,32], index: 14, kind: input, shape index: {}]   ;;  %s3742_s15 = inlined_call_operand.hbm [shape: f32[2,1,32], index: 15, kind: input, shape index: {}]   ;;  %s3743_s16 = inlined_call_operand.hbm [shape: f32[2,1,32], index: 16, kind: input, shape index: {}]   ;;  %s3744_s17 = inlined_call_operand.hbm [shape: f32[2,32,64], index: 17, kind: input, shape index: {}]   ;;  %s3745_s18 = inlined_call_operand.hbm [shape: f32[2,1,64], index: 18, kind: input, shape index: {}]   ;;  %s3746_s19 = inlined_call_operand.vmem [shape: f32[2,64,32], index: 19, kind: input, shape index: {}]   ;;  %s3747_s20 = inlined_call_operand.hbm [shape: f32[2,1,32], index: 20, kind: input, shape index: {}]   ;;  %s3748_s21 = inlined_call_operand.vmem [shape: f32[32,16], index: 21, kind: input, shape index: {}]   ;;  %s3749_s22 = inlined_call_operand.vmem [shape: f32[1,16], index: 22, kind: input, shape index: {}]   ;;  %s3750_s23 = inlined_call_operand.vmem [shape: f32[1,16], index: 23, kind: input, shape index: {}]   ;;  %s3751_s24 = inlined_call_operand.vmem [shape: f32[1,16], index: 24, kind: input, shape index: {}]   ;;  %s3752_s25 = inlined_call_operand.hbm [shape: f32[16,16], index: 25, kind: output, shape index: {}]  }
   0x1   :  { %3756 = sst [smem:[#allocation40_spill]] %s3727_s0 }
   0x2   :  { %3757 = sst [smem:[#allocation41_spill]] %s3728_s1 }
   0x3   :  { %3758 = sst [smem:[#allocation42_spill]] %s3729_s2 }
   0x4   :  { %3759 = sst [smem:[#allocation43_spill]] %s3730_s3 }
   0x5   :  { %3760 = sst [smem:[#allocation44_spill]] %s3731_s4 }
   0x6   :  { %3761 = sst [smem:[#allocation45_spill]] %s3732_s5 }
   0x7   :  { %3762 = sst [smem:[#allocation46_spill]] %s3733_s6 }
   0x8   :  { %3763 = sst [smem:[#allocation47_spill]] %s3734_s7 }
   0x9   :  { %3764 = sst [smem:[#allocation48_spill]] %s3735_s8 }
   0xa   :  { %3765 = sst [smem:[#allocation49_spill]] %s3736_s9 }
   0xb   :  { %3766 = sst [smem:[#allocation50_spill]] %s3750_s23 }
   0xc   :  { %3767 = sst [smem:[#allocation51_spill]] %s3751_s24 }
   0xd   :  { %3768 = sst [smem:[#allocation52_spill]] %s3752_s25 }
   0xe   :  { %30 = vsyncpa [#allocation4], 0 }
   0xf   :  { %31 = vsyncpa [#allocation7], 0 }
  0x10   :  { %32 = vsyncpa [#allocation10], 0 }
  0x11   :  { %33 = vsyncpa [#allocation13], 0 }
  0x12   :  { %34 = vsyncpa [#allocation16], 0 }
  0x13   :  { %35 = vsyncpa [#allocation19], 0 }
  0x14   :  { %36 = vsyncpa [#allocation22], 0 }
  0x15   :  { %37 = vsyncpa [#allocation25], 0 }
  0x16   :  { %38 = vsyncpa [#allocation28], 0 }
  0x17   :  { %39 = vsyncpa [#allocation5], 0  ;;  %s3769_s6 = sld [smem:[#allocation41_spill]]  ;;  %s3033_s7 = smov [#allocation6]  }
  0x18   :  { %s59_s3 = sshll.u32 %s3033_s7, 4  ;;  %s3770_s8 = sld [smem:[#allocation43_spill]]  ;;  %s60_s3 = int_to_ptr.vmem [resolvable:$true] %s59_s3 }
  0x19   :  { %s3034_s4 = smov 128   ;;  %s3035_s28 = smov 8  }
  0x1a   :  { %s3036_s9 = smov [#allocation9]   ;;  %s3771_s2 = sld [smem:[#allocation46_spill]] }
  0x1b   :  { %s84_s5 = sshll.u32 %s3036_s9, 4  ;;  %s3037_s7 = smov [#allocation12]   ;;  %s85_s5 = int_to_ptr.vmem [resolvable:$true] %s84_s5 }
  0x1c   :  { %s107_s25 = sshll.u32 %s3037_s7, 4  ;;  %s3038_s24 = smov 16   ;;  %s108_s25 = int_to_ptr.vmem [resolvable:$true] %s107_s25 }
  0x1d   :  { %s57_s30 = sshll.u32 %s3769_s6, 4  ;;  %s3039_s23 = smov 1   ;;  %s58_s30 = int_to_ptr.hbm [resolvable:$true] %s57_s30 }
  0x1e   :  { %s82_s27 = sshll.u32 %s3770_s8, 4  ;;  %s135_s8 = sshll.u32 %s3737_s10, 4  ;;  %s83_s27 = int_to_ptr.hbm [resolvable:$true] %s82_s27  ;;  %s136_s8 = int_to_ptr.hbm [resolvable:$true] %s135_s8 }
  0x1f   :  { %65 = dma.hbm_to_vmem [thread:$0]  %s58_s30, 256, %s60_s3, [#allocation7], %s3034_s4, %s3034_s4, %s3035_s28  }
  0x20   :  { %s105_s6 = sshll.u32 %s3771_s2, 4  ;;  %s3040_s30 = smov [#allocation15]   ;;  %s106_s6 = int_to_ptr.hbm [resolvable:$true] %s105_s6 }
  0x21   :  { %87 = dma.hbm_to_vmem [thread:$0]  %s83_s27, 16, %s85_s5, [#allocation10]  }
  0x22   :  { %113 = dma.hbm_to_vmem [thread:$0]  %s106_s6, 32, %s108_s25, [#allocation13], %s3038_s24, %s3038_s24, %s3039_s23  }
  0x23   :  { %s137_s3 = sshll.u32 %s3040_s30, 4  ;;  %s163_s27 = sshll.u32 %s3740_s13, 4  ;;  %s138_s3 = int_to_ptr.vmem [resolvable:$true] %s137_s3  ;;  %s164_s27 = int_to_ptr.hbm [resolvable:$true] %s163_s27 }
  0x24   :  { %143 = dma.hbm_to_vmem [thread:$0]  %s136_s8, 32, %s138_s3, [#allocation16], %s3038_s24, %s3038_s24, %s3039_s23  }
  0x25   :  { %s189_s29 = sshll.u32 %s3742_s15, 4  ;;  %s3041_s2 = smov [#allocation18]   ;;  %s190_s29 = int_to_ptr.hbm [resolvable:$true] %s189_s29 }
  0x26   :  { %s165_s7 = sshll.u32 %s3041_s2, 4  ;;  %s3042_s25 = smov [#allocation21]   ;;  %s166_s7 = int_to_ptr.vmem [resolvable:$true] %s165_s7 }
  0x27   :  { %171 = dma.hbm_to_vmem [thread:$0]  %s164_s27, 1024, %s166_s7, [#allocation19], %s3034_s4, %s3034_s4, %s3035_s28  }
  0x28   :  { %s191_s13 = sshll.u32 %s3042_s25, 4  ;;  %s215_s1 = sshll.u32 %s3744_s17, 4  ;;  %s192_s13 = int_to_ptr.vmem [resolvable:$true] %s191_s13  ;;  %s216_s1 = int_to_ptr.hbm [resolvable:$true] %s215_s1 }
  0x29   :  { %197 = dma.hbm_to_vmem [thread:$0]  %s190_s29, 32, %s192_s13, [#allocation22], %s3038_s24, %s3038_s24, %s3039_s23  }
  0x2a   :  { %s3772_s30 = sld [smem:[#allocation40_spill]]  ;;  %s3043_s9 = smov [#allocation24]  }
  0x2b   :  { %s217_s0 = sshll.u32 %s3043_s9, 4  ;;  %s3044_s27 = smov [#allocation3]   ;;  %s218_s0 = int_to_ptr.vmem [resolvable:$true] %s217_s0 }
  0x2c   :  { %223 = dma.hbm_to_vmem [thread:$0]  %s216_s1, 1024, %s218_s0, [#allocation25], %s3034_s4, %s3034_s4, %s3035_s28  }
  0x2d   :  { %s46_s17 = sshll.u32 %s3044_s27, 4  ;;  %s3773_s2 = sld [smem:[#allocation42_spill]]  ;;  %s47_s17 = int_to_ptr.vmem [resolvable:$true] %s46_s17 }
  0x2e   :  { %s3774_s13 = sld [smem:[#allocation44_spill]]  ;;  %s3045_s26 = smov [#allocation8]  }
  0x2f   :  { %s73_s15 = sshll.u32 %s3045_s26, 4  ;;  %s3046_s1 = smov [#allocation11]   ;;  %s74_s15 = int_to_ptr.vmem [resolvable:$true] %s73_s15 }
  0x30   :  { %s44_s3 = sshll.u32 %s3772_s30, 4  ;;  %s95_s8 = sshll.u32 %s3046_s1, 4  ;;  %s45_s3 = int_to_ptr.hbm [resolvable:$true] %s44_s3  ;;  %s96_s8 = int_to_ptr.vmem [resolvable:$true] %s95_s8 }
  0x31   :  { %52 = dma.hbm_to_vmem [thread:$0]  %s45_s3, 256, %s47_s17, [#allocation4], %s3034_s4, %s3034_s4, %s3035_s28  }
  0x32   :  { %s3775_s0 = sld [smem:[#allocation48_spill]]  ;;  %s150_s17 = sshll.u32 %s3739_s12, 4  ;;  %s151_s17 = int_to_ptr.hbm [resolvable:$true] %s150_s17 }
  0x33   :  { %s71_s7 = sshll.u32 %s3773_s2, 4  ;;  %s3047_s5 = smov [#allocation14]   ;;  %s72_s7 = int_to_ptr.hbm [resolvable:$true] %s71_s7 }
  0x34   :  { %s93_s6 = sshll.u32 %s3774_s13, 4  ;;  %s122_s2 = sshll.u32 %s3047_s5, 4  ;;  %s94_s6 = int_to_ptr.hbm [resolvable:$true] %s93_s6  ;;  %s123_s2 = int_to_ptr.vmem [resolvable:$true] %s122_s2 }
  0x35   :  { %76 = dma.hbm_to_vmem [thread:$0]  %s72_s7, 16, %s74_s15, [#allocation7]  }
  0x36   :  { %98 = dma.hbm_to_vmem [thread:$0]  %s94_s6, 16, %s96_s8, [#allocation10]  }
  0x37   :  { %s3048_s7 = smov [#allocation17]   ;;  %s176_s26 = sshll.u32 %s3741_s14, 4  ;;  %s177_s26 = int_to_ptr.hbm [resolvable:$true] %s176_s26 }
  0x38   :  { %s120_s27 = sshll.u32 %s3775_s0, 4  ;;  %s152_s29 = sshll.u32 %s3048_s7, 4  ;;  %s121_s27 = int_to_ptr.hbm [resolvable:$true] %s120_s27  ;;  %s153_s29 = int_to_ptr.vmem [resolvable:$true] %s152_s29 }
  0x39   :  { %128 = dma.hbm_to_vmem [thread:$0]  %s121_s27, 32, %s123_s2, [#allocation13], %s3038_s24, %s3038_s24, %s3039_s23  }
  0x3a   :  { %158 = dma.hbm_to_vmem [thread:$0]  %s151_s17, 32, %s153_s29, [#allocation16], %s3038_s24, %s3038_s24, %s3039_s23  }
  0x3b   :  { %s202_s15 = sshll.u32 %s3743_s16, 4  ;;  %s3049_s1 = smov [#allocation20]   ;;  %s203_s15 = int_to_ptr.hbm [resolvable:$true] %s202_s15 }
  0x3c   :  { %s178_s8 = sshll.u32 %s3049_s1, 4  ;;  %s3050_s30 = smov [#allocation23]   ;;  %s179_s8 = int_to_ptr.vmem [resolvable:$true] %s178_s8 }
  0x3d   :  { %184 = dma.hbm_to_vmem [thread:$0]  %s177_s26, 32, %s179_s8, [#allocation19], %s3038_s24, %s3038_s24, %s3039_s23  }
  0x3e   :  { %s204_s14 = sshll.u32 %s3050_s30, 4  ;;  %s228_s27 = sshll.u32 %s3745_s18, 4  ;;  %s205_s14 = int_to_ptr.vmem [resolvable:$true] %s204_s14  ;;  %s229_s27 = int_to_ptr.hbm [resolvable:$true] %s228_s27 }
  0x3f   :  { %210 = dma.hbm_to_vmem [thread:$0]  %s203_s15, 32, %s205_s14, [#allocation22], %s3038_s24, %s3038_s24, %s3039_s23  }
  0x40   :  { %s243_s3 = sshll.u32 %s3747_s20, 4  ;;  %s3051_s17 = smov [#allocation26]   ;;  %s244_s3 = int_to_ptr.hbm [resolvable:$true] %s243_s3 }
  0x41   :  { %s230_s5 = sshll.u32 %s3051_s17, 4  ;;  %s3052_s2 = smov [#allocation27]   ;;  %s231_s5 = int_to_ptr.vmem [resolvable:$true] %s230_s5 }
  0x42   :  { %236 = dma.hbm_to_vmem [thread:$0]  %s229_s27, 32, %s231_s5, [#allocation25], %s3038_s24, %s3038_s24, %s3039_s23  }
  0x43   :  { %s245_s18 = sshll.u32 %s3052_s2, 4  ;;  %s246_s18 = int_to_ptr.vmem [resolvable:$true] %s245_s18 }
  0x44   :  { %251 = dma.hbm_to_vmem [thread:$0]  %s244_s3, 32, %s246_s18, [#allocation28], %s3038_s24, %s3038_s24, %s3039_s23  }
  0x45   :  { %3013 = dma.done.wait [#allocation4], 256  }
  0x46   :  { %3014 = vsyncadd [#allocation4], 4294967040 }
  0x47   :  { %3015 = dma.done.wait [#allocation7], 272  }
  0x48   :  { %3016 = vsyncadd [#allocation7], 4294967024 }
  0x49   :  { %3017 = dma.done.wait [#allocation10], 32  }
  0x4a   :  { %3018 = vsyncadd [#allocation10], 4294967264 }
  0x4b   :  { %3019 = dma.done.wait [#allocation13], 64  }
  0x4c   :  { %3020 = vsyncadd [#allocation13], 4294967232 }
  0x4d   :  { %3021 = dma.done.wait [#allocation16], 64  }
  0x4e   :  { %3022 = vsyncadd [#allocation16], 4294967232 }
  0x4f   :  { %3023 = dma.done.wait [#allocation19], 1056  }
  0x50   :  { %3024 = vsyncadd [#allocation19], 4294966240 }
  0x51   :  { %3025 = dma.done.wait [#allocation22], 64  }
  0x52   :  { %3026 = vsyncadd [#allocation22], 4294967232 }
  0x53   :  { %3027 = dma.done.wait [#allocation25], 1056  }
  0x54   :  { %3028 = vsyncadd [#allocation25], 4294966240 }
  0x55   :  { %3029 = dma.done.wait [#allocation28], 32  }
  0x56   :  { %3030 = vsyncadd [#allocation28], 4294967264  ;;  %v327_v0 = vld [vmem:[#allocation6 + $0x8] sm:$0xff]  ;;  %v326_v1 = vld [vmem:[#allocation6] sm:$0xff]  ;;  %vm332_vm0 = vcmask 130048   ;;  %vm364_vm1 = vcmask 261120  }
  0x57   :  { %353 = vmatpush.msra.mxu0 %v327_v0  ;;  %v324_v2 = vld [vmem:[#allocation3] sm:$0xff]  ;;  %v325_v3 = vld [vmem:[#allocation3 + $0x8] sm:$0xff]  ;;  %v3053_v11 = vmov 32.0   ;;  %s3776_s7 = sld [smem:[#allocation47_spill]]  ;;  %s3054_s12 = smov 120   ;;  %vm585_vm15 = vcmask 64512  }
  0x58   :  { %v2487_v4 = vld [vmem:[#allocation8] ss:$0 sm:$0xff]  ;;  %2513 = vrcp.f32 %v3053_v11  ;;  %v2488_v42 = vld [vmem:[#allocation9] ss:$0 sm:$0xff]  ;;  %v2489_v46 = vld [vmem:[#allocation11] ss:$0 sm:$0xff] }
  0x59   :  { %354 = vmatpush.msra.mxu0 %v326_v1  ;;  %s3777_s13 = sld [smem:[#allocation49_spill]]  ;;  %v554_v11 = vld [vmem:[%s3738_s11 + $0x10] sm:$0xff]  ;;  %s3055_s6 = smov 112  }
  0x5a   :  { %2348 = vmatmul.msk.f32.vlgmr.msra.gmra.mxu0 %vm332_vm0, %v324_v2  ;;  %s3778_s26 = sld [smem:[#allocation45_spill]]  ;;  %s3056_s15 = smov 104  }
  0x5b   :  { %s3057_s1 = smov 24   ;;  %s3781_s16 = sld [smem:[#allocation52_spill]] }
  0x5e   :  { %v2514_v12 = vpop.eup %2513 }
  0x5f   :  { %v372_v13 = vmul.f32 32.0, %v2514_v12  ;;  %vm376_vm2 = vweird.f32 %v2514_v12 }
  0x61   :  { %v373_v14 = vsub.f32 1.0, %v372_v13  ;;  %v522_v13 = vld [vmem:[%s3777_s13 + $0x8] sm:$0xff]  ;;  %s2327_s10 = sshll.u32 %s3781_s16, 4  ;;  %s2328_s10 = int_to_ptr.hbm [resolvable:$true] %s2327_s10 }
  0x62   :  { %2349 = vmatmul.msk.f32.gmra.mxu0 %vm332_vm0, %v325_v3 }
  0x63   :  { %v374_v15 = vmul.f32 %v2514_v12, %v373_v14  ;;  %v553_v14 = vld [vmem:[%s3738_s11 + $0x8] sm:$0xff] }
  0x65   :  { %v375_v16 = vadd.f32 %v2514_v12, %v374_v15  ;;  %v484_v15 = vld [vmem:[%s3776_s7] sm:$0xff] }
  0x67   :  { %v3281_v17 = vsel %vm376_vm2, %v2514_v12, %v375_v16  ;;  %v485_v12 = vld [vmem:[%s3776_s7 + $0x8] sm:$0xff]  ;;  %v521_v16 = vld [vmem:[%s3777_s13] sm:$0xff]  ;;  %vm848_vm2 = vcmask 130112  }
  0xd7   :  { %v356_v5 = vpop.f32.mrf.mxu0 }
  0xd8   :  { %v357_v6 = vadd.f32 %v2487_v4, %v356_v5 }
  0xda   :  { %v365_v7 = vsel %vm364_vm1, %v357_v6, 0.0 }
  0xdb   :  { %366 = vadd.xlane.f32.xlu0 %v365_v7  ;;  %v524_v7 = vld [vmem:[%s3777_s13 + $0x18] sm:$0xff] }
  0xdc   :  { %541 = vmatpush.msra.mxu2 %v524_v7 }
  0xdf   :  { %v359_v8 = vpop.f32.mrf.mxu0 }
  0xe0   :  { %v360_v9 = vadd.f32 %v2487_v4, %v359_v8  ;;  %v555_v8 = vld [vmem:[%s3738_s11 + $0x18] sm:$0xff] }
  0xe1   :  { %572 = vmatpush.msra.mxu3 %v555_v8 }
  0xe2   :  { %v368_v10 = vsel %vm364_vm1, %v360_v9, 0.0 }
  0xe3   :  { %369 = vadd.xlane.f32.xlu0 %v368_v10  ;;  %v523_v10 = vld [vmem:[%s3777_s13 + $0x10] sm:$0xff]  ;;  %573 = vmatpush.msra.mxu3 %v554_v11 }
  0xe4   :  { %542 = vmatpush.msra.mxu2 %v523_v10 }
  0xe5   :  { %574 = vmatpush.msra.mxu3 %v553_v14 }
  0xe6   :  { %543 = vmatpush.msra.mxu2 %v522_v13 }
  0xe8   :  { %544 = vmatpush.msra.mxu2 %v521_v16 }
 0x14e   :  { %v367_v18 = vpop.xlane.xlu0 %366 }
 0x14f   :  { %v378_v19 = vmul.f32 %v3281_v17, %v367_v18  ;;  %v552_v18 = vld [vmem:[%s3738_s11] sm:$0xff] }
 0x150   :  { %575 = vmatpush.msra.mxu3 %v552_v18 }
 0x151   :  { %v380_v20 = vsub.f32 %v357_v6, %v378_v19  ;;  %v487_v6 = vld [vmem:[%s3776_s7 + $0x18] sm:$0xff] }
 0x152   :  { %510 = vmatpush.msra.mxu1 %v487_v6 }
 0x153   :  { %v382_v21 = vmul.f32 %v380_v20, %v380_v20 }
 0x155   :  { %v384_v22 = vsel %vm364_vm1, %v382_v21, 0.0 }
 0x156   :  { %385 = vadd.xlane.f32.xlu1 %v384_v22  ;;  %v370_v23 = vpop.xlane.xlu0 %369 }
 0x157   :  { %v379_v24 = vmul.f32 %v3281_v17, %v370_v23 }
 0x159   :  { %v381_v25 = vsub.f32 %v360_v9, %v379_v24  ;;  %v486_v9 = vld [vmem:[%s3776_s7 + $0x10] sm:$0xff] }
 0x15a   :  { %511 = vmatpush.msra.mxu1 %v486_v9 }
 0x15b   :  { %v383_v26 = vmul.f32 %v381_v25, %v381_v25 }
 0x15c   :  { %512 = vmatpush.msra.mxu1 %v485_v12 }
 0x15d   :  { %v387_v27 = vsel %vm364_vm1, %v383_v26, 0.0 }
 0x15e   :  { %388 = vadd.xlane.f32.xlu1 %v387_v27  ;;  %513 = vmatpush.msra.mxu1 %v484_v15 }
 0x1c9   :  { %v386_v28 = vpop.xlane.xlu1 %385 }
 0x1ca   :  { %v390_v29 = vmul.f32 %v386_v28, %v3281_v17 }
 0x1cc   :  { %v392_v30 = vadd.f32 1e-05, %v390_v29 }
 0x1ce   :  { %2515 = vrsqrt.f32 %v392_v30  ;;  %vm400_vm4 = vweird.f32 %v392_v30 }
 0x1d1   :  { %v389_v31 = vpop.xlane.xlu1 %388 }
 0x1d2   :  { %v391_v32 = vmul.f32 %v389_v31, %v3281_v17 }
 0x1d4   :  { %v2516_v33 = vpop.eup %2515  ;;  %v393_v34 = vadd.f32 1e-05, %v391_v32 }
 0x1d5   :  { %v395_v35 = vmul.f32 %v2516_v33, %v392_v30  ;;  %vm401_vm3 = vweird.f32 %v2516_v33 }
 0x1d6   :  { %2517 = vrsqrt.f32 %v393_v34  ;;  %vm402_vm5 = vmor %vm400_vm4, %vm401_vm3  ;;  %vm410_vm7 = vweird.f32 %v393_v34  ;;  %vm989_vm3 = vcmask 195712   ;;  %vm1130_vm4 = vcmask 261312  }
 0x1d7   :  { %v396_v36 = vmul.f32 %v2516_v33, %v395_v35 }
 0x1d9   :  { %v397_v37 = vmul.f32 0.5, %v396_v36 }
 0x1db   :  { %v398_v38 = vsub.f32 1.5, %v397_v37  ;;  %v2491_v37 = vld [vmem:[#allocation12] ss:$0 sm:$0xff] }
 0x1dc   :  { %v2518_v39 = vpop.eup %2517 }
 0x1dd   :  { %v399_v40 = vmul.f32 %v2516_v33, %v398_v38  ;;  %v405_v41 = vmul.f32 %v2518_v39, %v393_v34  ;;  %vm411_vm6 = vweird.f32 %v2518_v39 }
 0x1de   :  { %vm412_vm8 = vmor %vm410_vm7, %vm411_vm6 }
 0x1df   :  { %v403_v43 = vsel %vm402_vm5, %v2516_v33, %v399_v40  ;;  %v406_v44 = vmul.f32 %v2518_v39, %v405_v41  ;;  %v2490_v33 = vld [vmem:[%s3778_s26] ss:$0 sm:$0xff] }
 0x1e0   :  { %v414_v45 = vmul.f32 %v403_v43, %v380_v20 }
 0x1e1   :  { %v407_v47 = vmul.f32 0.5, %v406_v44 }
 0x1e2   :  { %v419_v48 = vmul.f32 %v2488_v42, %v414_v45 }
 0x1e3   :  { %v408_v49 = vsub.f32 1.5, %v407_v47  ;;  %v2492_v47 = vld [vmem:[#allocation14] ss:$0 sm:$0xff] }
 0x1e4   :  { %v424_v50 = vadd.f32 %v2489_v46, %v419_v48 }
 0x1e5   :  { %v409_v51 = vmul.f32 %v2518_v39, %v408_v49 }
 0x1e6   :  { %v3289_v52 = vmax.f32 %v424_v50, 0.0 }
 0x1e7   :  { %v413_v53 = vsel %vm412_vm8, %v2518_v39, %v409_v51  ;;  %v2493_v51 = vld [vmem:[#allocation15] ss:$0 sm:$0xff] }
 0x1e8   :  { %v430_v54 = vsel %vm364_vm1, %v3289_v52, 0.0  ;;  %v415_v55 = vmul.f32 %v413_v53, %v381_v25  ;;  %v2494_v53 = vld [vmem:[#allocation17] ss:$0 sm:$0xff] }
 0x1e9   :  { %431 = vadd.xlane.f32.xlu2 %v430_v54 }
 0x1ea   :  { %v420_v56 = vmul.f32 %v2488_v42, %v415_v55 }
 0x1ec   :  { %v425_v57 = vadd.f32 %v2489_v46, %v420_v56 }
 0x1ee   :  { %v3293_v58 = vmax.f32 %v425_v57, 0.0 }
 0x1f0   :  { %v433_v59 = vsel %vm364_vm1, %v3293_v58, 0.0 }
 0x1f1   :  { %434 = vadd.xlane.f32.xlu2 %v433_v59 }
 0x25c   :  { %v432_v60 = vpop.xlane.xlu2 %431 }
 0x25d   :  { %v436_v61 = vmul.f32 %v432_v60, %v3281_v17 }
 0x25f   :  { %v438_v62 = vsub.f32 %v3289_v52, %v436_v61 }
 0x261   :  { %v440_v63 = vmul.f32 %v438_v62, %v438_v62 }
 0x263   :  { %v442_v0 = vsel %vm364_vm1, %v440_v63, 0.0 }
 0x264   :  { %443 = vadd.xlane.f32.xlu0 %v442_v0  ;;  %v435_v1 = vpop.xlane.xlu2 %434 }
 0x265   :  { %v437_v2 = vmul.f32 %v435_v1, %v3281_v17 }
 0x267   :  { %v3302_v3 = vsub.f32 %v3293_v58, %v437_v2 }
 0x269   :  { %v441_v4 = vmul.f32 %v3302_v3, %v3302_v3 }
 0x26b   :  { %v445_v5 = vsel %vm364_vm1, %v441_v4, 0.0 }
 0x26c   :  { %446 = vadd.xlane.f32.xlu1 %v445_v5 }
 0x2d7   :  { %v444_v19 = vpop.xlane.xlu0 %443 }
 0x2d8   :  { %v448_v20 = vmul.f32 %v444_v19, %v3281_v17 }
 0x2da   :  { %v450_v21 = vadd.f32 1e-05, %v448_v20 }
 0x2dc   :  { %2519 = vrsqrt.f32 %v450_v21  ;;  %vm458_vm10 = vweird.f32 %v450_v21 }
 0x2df   :  { %v447_v22 = vpop.xlane.xlu1 %446 }
 0x2e0   :  { %v449_v23 = vmul.f32 %v447_v22, %v3281_v17 }
 0x2e2   :  { %v2520_v24 = vpop.eup %2519  ;;  %v451_v25 = vadd.f32 1e-05, %v449_v23 }
 0x2e3   :  { %v453_v26 = vmul.f32 %v2520_v24, %v450_v21  ;;  %vm459_vm9 = vweird.f32 %v2520_v24 }
 0x2e4   :  { %2521 = vrsqrt.f32 %v451_v25  ;;  %vm460_vm11 = vmor %vm458_vm10, %vm459_vm9  ;;  %vm468_vm13 = vweird.f32 %v451_v25 }
 0x2e5   :  { %v454_v27 = vmul.f32 %v2520_v24, %v453_v26 }
 0x2e7   :  { %v455_v28 = vmul.f32 0.5, %v454_v27 }
 0x2e9   :  { %v456_v29 = vsub.f32 1.5, %v455_v28 }
 0x2ea   :  { %v2522_v30 = vpop.eup %2521 }
 0x2eb   :  { %v457_v31 = vmul.f32 %v2520_v24, %v456_v29  ;;  %v463_v32 = vmul.f32 %v2522_v30, %v451_v25  ;;  %vm469_vm12 = vweird.f32 %v2522_v30 }
 0x2ec   :  { %vm470_vm14 = vmor %vm468_vm13, %vm469_vm12 }
 0x2ed   :  { %v461_v34 = vsel %vm460_vm11, %v2520_v24, %v457_v31  ;;  %v464_v35 = vmul.f32 %v2522_v30, %v463_v32  ;;  %vm1279_vm11 = vcmask 523264  }
 0x2ee   :  { %v472_v36 = vmul.f32 %v461_v34, %v438_v62 }
 0x2ef   :  { %v465_v38 = vmul.f32 0.5, %v464_v35 }
 0x2f0   :  { %v477_v39 = vmul.f32 %v2490_v33, %v472_v36 }
 0x2f1   :  { %v466_v40 = vsub.f32 1.5, %v465_v38 }
 0x2f2   :  { %v482_v41 = vadd.f32 %v2491_v37, %v477_v39 }
 0x2f3   :  { %v467_v42 = vmul.f32 %v2522_v30, %v466_v40 }
 0x2f4   :  { %2350 = vmatmul.msk.f32.vlgmr.msra.gmra.mxu1 %vm364_vm1, %v482_v41  ;;  %2352 = vmatmul.msk.f32.vlgmr.msra.gmra.mxu2 %vm364_vm1, %v482_v41 }
 0x2f5   :  { %v471_v43 = vsel %vm470_vm14, %v2522_v30, %v467_v42  ;;  %2354 = vmatmul.msk.f32.vlgmr.msra.gmra.mxu3 %vm364_vm1, %v482_v41 }
 0x2f6   :  { %v473_v44 = vmul.f32 %v471_v43, %v3302_v3 }
 0x2f8   :  { %v478_v45 = vmul.f32 %v2490_v33, %v473_v44 }
 0x2fa   :  { %v483_v46 = vadd.f32 %v2491_v37, %v478_v45 }
 0x2fc   :  { %2351 = vmatmul.msk.f32.gmra.mxu1 %vm364_vm1, %v483_v46  ;;  %2353 = vmatmul.msk.f32.gmra.mxu2 %vm364_vm1, %v483_v46 }
 0x2fd   :  { %2355 = vmatmul.msk.f32.gmra.mxu3 %vm364_vm1, %v483_v46 }
 0x371   :  { %v515_v48 = vpop.f32.mrf.mxu1 }
 0x372   :  { %v516_v49 = vadd.f32 %v2492_v47, %v515_v48 }
 0x374   :  { %v583_v50 = vmul.f32 0.35355338, %v516_v49 }
 0x376   :  { %708 = vrot.lane.b32.xlu0 %v583_v50, %s3054_s12 }
 0x377   :  { %v546_v54 = vpop.f32.mrf.mxu2 }
 0x378   :  { %v547_v55 = vadd.f32 %v2493_v51, %v546_v54  ;;  %v577_v56 = vpop.f32.mrf.mxu3 }
 0x379   :  { %v3356_v57 = vadd.f32 %v2494_v53, %v577_v56  ;;  %v518_v59 = vpop.f32.mrf.mxu1 }
 0x37a   :  { %v519_v60 = vadd.f32 %v2492_v47, %v518_v59  ;;  %710 = vrot.lane.b32.xlu2 %v547_v55, %s3054_s12  ;;  %2356 = vmatpush.xpose.msk.msrb.mxu0 %vm585_vm15, %v547_v55 }
 0x37b   :  { %678 = vmatpush.msrb.mxu2 %v3356_v57 }
 0x37c   :  { %v584_v61 = vmul.f32 0.35355338, %v519_v60 }
 0x37d   :  { %2357 = vmatmul.msk.f32.vlgmr.msrb.gmra.mxu0 %vm585_vm15, %v583_v50 }
 0x37e   :  { %736 = vrot.lane.b32.xlu0 %v584_v61, %s3054_s12 }
 0x37f   :  { %v549_v62 = vpop.f32.mrf.mxu2 }
 0x380   :  { %v550_v63 = vadd.f32 %v2493_v51, %v549_v62  ;;  %v580_v0 = vpop.f32.mrf.mxu3 }
 0x381   :  { %v3363_v1 = vadd.f32 %v2494_v53, %v580_v0 }
 0x382   :  { %738 = vrot.lane.b32.xlu1 %v550_v63, %s3054_s12  ;;  %2358 = vmatpush.xpose.msk.msrb.mxu1 %vm585_vm15, %v550_v63 }
 0x383   :  { %701 = vmatpush.msrb.mxu3 %v3363_v1  ;;  %853 = vrot.lane.b32.xlu2 %v547_v55, %s3055_s6  ;;  %v2472_v41 = vpack.i.bf16 %v3363_v1, %v3356_v57 }
 0x385   :  { %2359 = vmatmul.msk.f32.vlgmr.msrb.gmra.mxu1 %vm585_vm15, %v584_v61 }
 0x386   :  { %994 = vrot.lane.b32.xlu0 %v547_v55, %s3056_s15 }
 0x38a   :  { %881 = vrot.lane.b32.xlu1 %v550_v63, %s3055_s6 }
 0x38b   :  { %851 = vrot.lane.b32.xlu2 %v583_v50, %s3055_s6 }
 0x38e   :  { %1022 = vrot.lane.b32.xlu0 %v550_v63, %s3056_s15 }
 0x392   :  { %992 = vrot.lane.b32.xlu1 %v583_v50, %s3056_s15 }
 0x393   :  { %879 = vrot.lane.b32.xlu2 %v584_v61, %s3055_s6 }
 0x39b   :  { %1020 = vrot.lane.b32.xlu2 %v584_v61, %s3056_s15 }
 0x3d4   :  { %v711_v2 = vpop.permute.xlu2 %710 }
 0x3d5   :  { %2362 = vmatpush.xpose.msk.msra.mxu0 %vm585_vm15, %v711_v2 }
 0x3dd   :  { %v854_v3 = vpop.permute.xlu2 %853 }
 0x3de   :  { %2368 = vmatpush.xpose.msk.msrb.mxu0 %vm585_vm15, %v854_v3 }
 0x3e5   :  { %v852_v5 = vpop.permute.xlu2 %851 }
 0x3e8   :  { %v709_v4 = vpop.permute.xlu0 %708 }
 0x3e9   :  { %2363 = vmatmul.msk.f32.vlgmr.msra.gmra.mxu0 %vm585_vm15, %v709_v4 }
 0x3ed   :  { %v880_v12 = vpop.permute.xlu2 %879 }
 0x3f0   :  { %v737_v6 = vpop.permute.xlu0 %736 }
 0x3f1   :  { %2369 = vmatmul.msk.f32.vlgmr.msrb.gmra.mxu0 %vm585_vm15, %v852_v5 }
 0x3f4   :  { %v739_v7 = vpop.permute.xlu1 %738 }
 0x3f5   :  { %2364 = vmatpush.xpose.msk.msra.mxu1 %vm585_vm15, %v739_v7  ;;  %v1021_v18 = vpop.permute.xlu2 %1020 }
 0x3f8   :  { %2365 = vmatmul.msk.f32.vlgmr.msra.gmra.mxu1 %vm585_vm15, %v737_v6  ;;  %v995_v8 = vpop.permute.xlu0 %994 }
 0x3f9   :  { %2374 = vmatpush.xpose.msk.msra.mxu0 %vm585_vm15, %v995_v8 }
 0x3fa   :  { %v609_v9 = vpop.f32.mrf.mxu0 }
 0x3fb   :  { %v638_v10 = vsel %vm585_vm15, %v609_v9, -inf }
 0x3fc   :  { %v882_v11 = vpop.permute.xlu1 %881  ;;  %639 = vmax.xlane.f32.xlu1 %v638_v10 }
 0x3fd   :  { %2370 = vmatpush.xpose.msk.msrb.mxu1 %vm585_vm15, %v882_v11 }
 0x400   :  { %2371 = vmatmul.msk.f32.vlgmr.msrb.gmra.mxu1 %vm585_vm15, %v880_v12  ;;  %v1023_v13 = vpop.permute.xlu0 %1022 }
 0x401   :  { %2376 = vmatpush.xpose.msk.msra.mxu1 %vm585_vm15, %v1023_v13 }
 0x402   :  { %v635_v14 = vpop.f32.mrf.mxu1 }
 0x403   :  { %v641_v15 = vsel %vm585_vm15, %v635_v14, -inf }
 0x404   :  { %v993_v16 = vpop.permute.xlu1 %992  ;;  %642 = vmax.xlane.f32.xlu0 %v641_v15 }
 0x405   :  { %2375 = vmatmul.msk.f32.vlgmr.msra.gmra.mxu0 %vm585_vm15, %v993_v16 }
 0x408   :  { %2377 = vmatmul.msk.f32.vlgmr.msra.gmra.mxu1 %vm585_vm15, %v1021_v18 }
 0x466   :  { %v733_v19 = vpop.f32.mrf.mxu0 }
 0x467   :  { %v764_v20 = vsel %vm585_vm15, %v733_v19, -inf }
 0x468   :  { %765 = vmax.xlane.f32.xlu2 %v764_v20 }
 0x46e   :  { %v876_v21 = vpop.f32.mrf.mxu0 }
 0x46f   :  { %v640_v22 = vpop.xlane.xlu1 %639  ;;  %v907_v23 = vsel %vm585_vm15, %v876_v21, -inf }
 0x470   :  { %v644_v24 = vsub.f32 %v609_v9, %v640_v22  ;;  %908 = vmax.xlane.f32.xlu0 %v907_v23 }
 0x472   :  { %v646_v25 = vmul.f32 1.442695, %v644_v24 }
 0x474   :  { %2523 = vpow2.f32 %v646_v25 }
 0x475   :  { %v761_v26 = vpop.f32.mrf.mxu1 }
 0x476   :  { %v767_v27 = vsel %vm585_vm15, %v761_v26, -inf }
 0x477   :  { %v643_v28 = vpop.xlane.xlu0 %642  ;;  %768 = vmax.xlane.f32.xlu1 %v767_v27 }
 0x478   :  { %v645_v30 = vsub.f32 %v635_v14, %v643_v28 }
 0x47a   :  { %v2524_v29 = vpop.eup %2523  ;;  %v648_v33 = vmul.f32 1.442695, %v645_v30 }
 0x47b   :  { %v650_v31 = vsel %vm585_vm15, %v2524_v29, 0.0 }
 0x47c   :  { %651 = vadd.xlane.f32.xlu2 %v650_v31  ;;  %2525 = vpow2.f32 %v648_v33 }
 0x47d   :  { %v904_v32 = vpop.f32.mrf.mxu1 }
 0x47e   :  { %v910_v36 = vsel %vm585_vm15, %v904_v32, -inf }
 0x482   :  { %v1017_v34 = vpop.f32.mrf.mxu0  ;;  %v2526_v39 = vpop.eup %2525 }
 0x483   :  { %v1048_v35 = vsel %vm585_vm15, %v1017_v34, -inf  ;;  %v653_v40 = vsel %vm585_vm15, %v2526_v39, 0.0 }
 0x484   :  { %1049 = vmax.xlane.f32.xlu1 %v1048_v35  ;;  %911 = vmax.xlane.f32.xlu2 %v910_v36 }
 0x485   :  { %v1045_v37 = vpop.f32.mrf.mxu1 }
 0x486   :  { %v1051_v38 = vsel %vm585_vm15, %v1045_v37, -inf }
 0x487   :  { %1052 = vmax.xlane.f32.xlu0 %v1051_v38 }
 0x48c   :  { %654 = vadd.xlane.f32.xlu1 %v653_v40 }
 0x49b   :  { %2473 = vrot.lane.b32.xlu0 %v2472_v41, %s3054_s12 }
 0x4db   :  { %v766_v42 = vpop.xlane.xlu2 %765 }
 0x4dc   :  { %v770_v43 = vsub.f32 %v733_v19, %v766_v42 }
 0x4de   :  { %v772_v44 = vmul.f32 1.442695, %v770_v43 }
 0x4e0   :  { %2527 = vpow2.f32 %v772_v44 }
 0x4e3   :  { %v909_v45 = vpop.xlane.xlu0 %908 }
 0x4e4   :  { %v913_v46 = vsub.f32 %v876_v21, %v909_v45 }
 0x4e6   :  { %v2528_v47 = vpop.eup %2527  ;;  %v915_v48 = vmul.f32 1.442695, %v913_v46 }
 0x4e7   :  { %v776_v49 = vsel %vm585_vm15, %v2528_v47, 0.0 }
 0x4e8   :  { %2529 = vpow2.f32 %v915_v48  ;;  %777 = vadd.xlane.f32.xlu0 %v776_v49 }
 0x4ea   :  { %v769_v50 = vpop.xlane.xlu1 %768 }
 0x4eb   :  { %v771_v51 = vsub.f32 %v761_v26, %v769_v50 }
 0x4ed   :  { %v774_v53 = vmul.f32 1.442695, %v771_v51 }
 0x4ee   :  { %v3403_v54 = vpop.eup %2529 }
 0x4ef   :  { %2531 = vpow2.f32 %v774_v53  ;;  %v652_v55 = vpop.xlane.xlu2 %651  ;;  %v919_v56 = vsel %vm585_vm15, %v3403_v54, 0.0 }
 0x4f0   :  { %2533 = vrcp.f32 %v652_v55  ;;  %920 = vadd.xlane.f32.xlu1 %v919_v56  ;;  %v1137_v55 = vld [vmem:[#allocation18 + $0x10] sm:$0xff]  ;;  %v1136_v56 = vld [vmem:[#allocation18 + $0x8] sm:$0xff] }
 0x4f5   :  { %v2532_v59 = vpop.eup %2531 }
 0x4f6   :  { %v2534_v60 = vpop.eup %2533  ;;  %v779_v61 = vsel %vm585_vm15, %v2532_v59, 0.0 }
 0x4f7   :  { %v912_v62 = vpop.xlane.xlu2 %911  ;;  %780 = vadd.xlane.f32.xlu2 %v779_v61  ;;  %v1050_v63 = vpop.xlane.xlu1 %1049  ;;  %v658_v0 = vmul.f32 %v2534_v60, %v2524_v29 }
 0x4f8   :  { %v914_v2 = vsub.f32 %v904_v32, %v912_v62  ;;  %v1054_v3 = vsub.f32 %v1017_v34, %v1050_v63 }
 0x4f9   :  { %2360 = vmatmul.msk.f32.vlgmr.msrb.gmra.mxu2 %vm585_vm15, %v658_v0 }
 0x4fa   :  { %v917_v4 = vmul.f32 1.442695, %v914_v2  ;;  %v1056_v5 = vmul.f32 1.442695, %v1054_v3  ;;  %v1053_v6 = vpop.xlane.xlu0 %1052  ;;  %v2495_v3 = vld [vmem:[#allocation20] ss:$0 sm:$0xff] }
 0x4fb   :  { %v1055_v7 = vsub.f32 %v1045_v37, %v1053_v6 }
 0x4fc   :  { %2535 = vpow2.f32 %v917_v4  ;;  %1070 = vrot.lane.b32.xlu0 %v3356_v57, %s3056_s15 }
 0x4fd   :  { %2537 = vpow2.f32 %v1056_v5  ;;  %v1058_v8 = vmul.f32 1.442695, %v1055_v7 }
 0x4ff   :  { %v655_v9 = vpop.xlane.xlu1 %654 }
 0x500   :  { %2539 = vrcp.f32 %v655_v9 }
 0x501   :  { %2541 = vpow2.f32 %v1058_v8 }
 0x502   :  { %v2536_v10 = vpop.eup %2535 }
 0x503   :  { %v2538_v11 = vpop.eup %2537  ;;  %v922_v12 = vsel %vm585_vm15, %v2536_v10, 0.0 }
 0x504   :  { %923 = vadd.xlane.f32.xlu2 %v922_v12  ;;  %v1060_v13 = vsel %vm585_vm15, %v2538_v11, 0.0 }
 0x505   :  { %1061 = vadd.xlane.f32.xlu1 %v1060_v13 }
 0x506   :  { %v2540_v14 = vpop.eup %2539 }
 0x507   :  { %v659_v15 = vmul.f32 %v2540_v14, %v2526_v39  ;;  %v2542_v16 = vpop.eup %2541 }
 0x508   :  { %v1063_v57 = vsel %vm585_vm15, %v2542_v16, 0.0 }
 0x509   :  { %2361 = vmatmul.msk.f32.vlgmr.msrb.gmra.mxu3 %vm585_vm15, %v659_v15 }
 0x50d   :  { %1064 = vadd.xlane.f32.xlu1 %v1063_v57  ;;  %v2474_v18 = vpop.permute.xlu0 %2473 }
 0x50e   :  { %v2476_v19 = vunpack.i.h.bf16 %v2474_v18  ;;  %v2475_v20 = vunpack.i.l.bf16 %v2474_v18 }
 0x510   :  { %808 = vmatpush.msra.mxu2 %v2475_v20  ;;  %835 = vmatpush.msra.mxu3 %v2476_v19  ;;  %v1235_v20 = vld [vmem:[#allocation24 + $0x18] sm:$0xff] }
 0x511   :  { %1258 = vmatpush.msrb.mxu1 %v1235_v20 }
 0x51c   :  { %2478 = vrot.lane.b32.xlu2 %v2472_v41, %s3055_s6 }
 0x526   :  { %1096 = vrot.lane.b32.xlu1 %v3363_v1, %s3056_s15 }
 0x55b   :  { %v778_v21 = vpop.xlane.xlu0 %777 }
 0x55c   :  { %2543 = vrcp.f32 %v778_v21  ;;  %v1234_v21 = vld [vmem:[#allocation24 + $0x10] sm:$0xff] }
 0x55d   :  { %1259 = vmatpush.msrb.mxu1 %v1234_v21 }
 0x562   :  { %v2544_v22 = vpop.eup %2543 }
 0x563   :  { %v784_v23 = vmul.f32 %v2544_v22, %v2528_v47  ;;  %v921_v27 = vpop.xlane.xlu1 %920  ;;  %v1233_v22 = vld [vmem:[#allocation24 + $0x8] sm:$0xff] }
 0x564   :  { %1260 = vmatpush.msrb.mxu1 %v1233_v22 }
 0x565   :  { %2366 = vmatmul.msk.f32.vlgmr.msra.gmra.mxu2 %vm585_vm15, %v784_v23  ;;  %v1232_v23 = vld [vmem:[#allocation24] sm:$0xff] }
 0x566   :  { %1261 = vmatpush.msrb.mxu1 %v1232_v23  ;;  %v2390_v23 = vld [vmem:[%s3776_s7 + $0x38] sm:$0xff] }
 0x56a   :  { %v781_v24 = vpop.xlane.xlu2 %780 }
 0x56b   :  { %2545 = vrcp.f32 %v781_v24 }
 0x56c   :  { %2547 = vrcp.f32 %v921_v27 }
 0x56e   :  { %v1071_v37 = vpop.permute.xlu0 %1070 }
 0x571   :  { %v2546_v25 = vpop.eup %2545 }
 0x572   :  { %v785_v26 = vmul.f32 %v2546_v25, %v2532_v59  ;;  %v2548_v30 = vpop.eup %2547  ;;  %v1135_v59 = vld [vmem:[#allocation18] sm:$0xff] }
 0x573   :  { %v927_v35 = vmul.f32 %v2548_v30, %v3403_v54  ;;  %v1138_v54 = vld [vmem:[#allocation18 + $0x18] sm:$0xff] }
 0x574   :  { %2367 = vmatmul.msk.f32.vlgmr.msra.gmra.mxu3 %vm585_vm15, %v785_v26  ;;  %1157 = vmatpush.msrb.mxu0 %v1138_v54  ;;  %v1277_v30 = vld [vmem:[%s3746_s19 + $0x30] sm:$0xff] }
 0x576   :  { %1158 = vmatpush.msrb.mxu0 %v1137_v55 }
 0x577   :  { %v924_v28 = vpop.xlane.xlu2 %923 }
 0x578   :  { %2549 = vrcp.f32 %v924_v28  ;;  %v1062_v31 = vpop.xlane.xlu1 %1061  ;;  %1159 = vmatpush.msrb.mxu0 %v1136_v56 }
 0x579   :  { %2551 = vrcp.f32 %v1062_v31 }
 0x57a   :  { %1160 = vmatpush.msrb.mxu0 %v1135_v59  ;;  %v1273_v59 = vld [vmem:[%s3746_s19 + $0x10] sm:$0xff] }
 0x57c   :  { %v680_v29 = vpop.f32.mrf.mxu2 }
 0x57d   :  { %706 = vst.msk [vmem:[#allocation2] sm:$0xff] %vm585_vm15, %v680_v29  ;;  %v1278_v29 = vld [vmem:[%s3746_s19 + $0x38] sm:$0xff] }
 0x57e   :  { %v2550_v1 = vpop.eup %2549 }
 0x57f   :  { %v2479_v32 = vpop.permute.xlu2 %2478  ;;  %v928_v36 = vmul.f32 %v2550_v1, %v2536_v10  ;;  %v2552_v38 = vpop.eup %2551  ;;  %v1276_v1 = vld [vmem:[%s3746_s19 + $0x28] sm:$0xff] }
 0x580   :  { %v2481_v33 = vunpack.i.h.bf16 %v2479_v32  ;;  %v2480_v34 = vunpack.i.l.bf16 %v2479_v32  ;;  %v1068_v39 = vmul.f32 %v2552_v38, %v2538_v11  ;;  %v1065_v40 = vpop.xlane.xlu1 %1064  ;;  %v1274_v38 = vld [vmem:[%s3746_s19 + $0x18] sm:$0xff] }
 0x581   :  { %2553 = vrcp.f32 %v1065_v40  ;;  %v2496_v40 = vld [vmem:[#allocation21] ss:$0 sm:$0xff] }
 0x582   :  { %950 = vmatpush.msrb.mxu2 %v2480_v34  ;;  %976 = vmatpush.msrb.mxu3 %v2481_v33 }
 0x583   :  { %2372 = vmatmul.msk.f32.vlgmr.msrb.gmra.mxu2 %vm585_vm15, %v927_v35  ;;  %2373 = vmatmul.msk.f32.vlgmr.msrb.gmra.mxu3 %vm585_vm15, %v928_v36  ;;  %v1275_v35 = vld [vmem:[%s3746_s19 + $0x20] sm:$0xff] }
 0x584   :  { %1091 = vmatpush.msra.mxu2 %v1071_v37 }
 0x586   :  { %1294 = vmatpush.msrb.mxu2 %v1278_v29  ;;  %v2388_v29 = vld [vmem:[%s3776_s7 + $0x28] sm:$0xff] }
 0x587   :  { %v2554_v42 = vpop.eup %2553 }
 0x588   :  { %v1069_v43 = vmul.f32 %v2554_v42, %v2542_v16  ;;  %1295 = vmatpush.msrb.mxu2 %v1277_v30  ;;  %v2394_v30 = vld [vmem:[%s3777_s13 + $0x28] sm:$0xff] }
 0x58a   :  { %1296 = vmatpush.msrb.mxu2 %v1276_v1  ;;  %v2387_v1 = vld [vmem:[%s3776_s7 + $0x20] sm:$0xff] }
 0x58b   :  { %2378 = vmatmul.msk.f32.vlgmr.msra.gmra.mxu2 %vm585_vm15, %v1068_v39 }
 0x58c   :  { %v703_v41 = vpop.f32.mrf.mxu3  ;;  %1297 = vmatpush.msrb.mxu2 %v1275_v35 }
 0x58d   :  { %707 = vst.msk [vmem:[#allocation2 + $0x8] sm:$0xff] %vm585_vm15, %v703_v41 }
 0x58e   :  { %1298 = vmatpush.msrb.mxu2 %v1274_v38 }
 0x590   :  { %1299 = vmatpush.msrb.mxu2 %v1273_v59 }
 0x598   :  { %v1097_v44 = vpop.permute.xlu1 %1096 }
 0x599   :  { %1117 = vmatpush.msra.mxu3 %v1097_v44 }
 0x59a   :  { %2379 = vmatmul.msk.f32.vlgmr.msra.gmra.mxu3 %vm585_vm15, %v1069_v43  ;;  %v2497_v43 = vld [vmem:[#allocation23] ss:$0 sm:$0xff] }
 0x59b   :  { %1403 = vmatpush.msrb.mxu3 %v2390_v23 }
 0x5e8   :  { %v810_v45 = vpop.f32.mrf.mxu2 }
 0x5e9   :  { %842 = vrot.lane.b32.xlu0 %v810_v45, %s3035_s28 }
 0x5f7   :  { %v837_v47 = vpop.f32.mrf.mxu3 }
 0x606   :  { %v952_v46 = vpop.f32.mrf.mxu2  ;;  %v978_v49 = vpop.f32.mrf.mxu3 }
 0x607   :  { %983 = vrot.lane.b32.xlu2 %v952_v46, %s3038_s24 }
 0x60e   :  { %v1093_v48 = vpop.f32.mrf.mxu2 }
 0x60f   :  { %844 = vrot.lane.b32.xlu2 %v837_v47, %s3035_s28  ;;  %1124 = vrot.lane.b32.xlu0 %v1093_v48, %s3057_s1 }
 0x617   :  { %985 = vrot.lane.b32.xlu0 %v978_v49, %s3038_s24 }
 0x61d   :  { %v1119_v50 = vpop.f32.mrf.mxu3 }
 0x61e   :  { %1126 = vrot.lane.b32.xlu1 %v1119_v50, %s3057_s1 }
 0x65b   :  { %v843_v51 = vpop.permute.xlu0 %842 }
 0x65c   :  { %849 = vst.msk [vmem:[#allocation2] sm:$0xff] %vm848_vm2, %v843_v51 }
 0x661   :  { %v984_v53 = vpop.permute.xlu2 %983 }
 0x662   :  { %990 = vst.msk [vmem:[#allocation2] sm:$0xff] %vm989_vm3, %v984_v53 }
 0x669   :  { %v845_v60 = vpop.permute.xlu2 %844 }
 0x66a   :  { %850 = vst.msk [vmem:[#allocation2 + $0x8] sm:$0xff] %vm848_vm2, %v845_v60  ;;  %v1272_v60 = vld [vmem:[%s3746_s19 + $0x8] sm:$0xff] }
 0x66b   :  { %1300 = vmatpush.msrb.mxu2 %v1272_v60 }
 0x681   :  { %v1125_v61 = vpop.permute.xlu0 %1124 }
 0x682   :  { %1131 = vst.msk [vmem:[#allocation2] sm:$0xff] %vm1130_vm4, %v1125_v61  ;;  %v1271_v61 = vld [vmem:[%s3746_s19] sm:$0xff] }
 0x683   :  { %1301 = vmatpush.msrb.mxu2 %v1271_v61 }
 0x689   :  { %v986_v62 = vpop.permute.xlu0 %985  ;;  %v1133_v63 = vld [vmem:[#allocation2] sm:$0xff] }
 0x68a   :  { %991 = vst.msk [vmem:[#allocation2 + $0x8] sm:$0xff] %vm989_vm3, %v986_v62  ;;  %2380 = vmatmul.msk.f32.vlgmr.msrb.gmra.mxu0 %vm364_vm1, %v1133_v63  ;;  %v2498_v62 = vld [vmem:[#allocation26] ss:$0 sm:$0xff] }
 0x690   :  { %v1127_v0 = vpop.permute.xlu1 %1126 }
 0x691   :  { %1132 = vst.msk [vmem:[#allocation2 + $0x8] sm:$0xff] %vm1130_vm4, %v1127_v0 }
 0x698   :  { %v1134_v2 = vld [vmem:[#allocation2 + $0x8] sm:$0xff] }
 0x699   :  { %2381 = vmatmul.msk.f32.gmra.mxu0 %vm364_vm1, %v1134_v2 }
 0x707   :  { %v1162_v4 = vpop.f32.mrf.mxu0 }
 0x708   :  { %v1168_v5 = vadd.f32 %v1162_v4, %v3289_v52 }
 0x70a   :  { %v3442_v6 = vadd.f32 %v2495_v3, %v1168_v5 }
 0x70c   :  { %v1178_v7 = vsel %vm364_vm1, %v3442_v6, 0.0 }
 0x70d   :  { %1179 = vadd.xlane.f32.xlu2 %v1178_v7  ;;  %v2499_v7 = vld [vmem:[#allocation27] ss:$0 sm:$0xff] }
 0x716   :  { %v1165_v8 = vpop.f32.mrf.mxu0 }
 0x717   :  { %v1169_v9 = vadd.f32 %v1165_v8, %v3293_v58 }
 0x719   :  { %v3447_v10 = vadd.f32 %v2495_v3, %v1169_v9 }
 0x71b   :  { %v1181_v11 = vsel %vm364_vm1, %v3447_v10, 0.0 }
 0x71c   :  { %1182 = vadd.xlane.f32.xlu0 %v1181_v11 }
 0x780   :  { %v1180_v12 = vpop.xlane.xlu2 %1179 }
 0x781   :  { %v1184_v13 = vmul.f32 %v1180_v12, %v3281_v17 }
 0x783   :  { %v1186_v52 = vsub.f32 %v3442_v6, %v1184_v13 }
 0x785   :  { %v1188_v14 = vmul.f32 %v1186_v52, %v1186_v52 }
 0x787   :  { %v1190_v15 = vsel %vm364_vm1, %v1188_v14, 0.0 }
 0x788   :  { %1191 = vadd.xlane.f32.xlu1 %v1190_v15 }
 0x78f   :  { %v1183_v16 = vpop.xlane.xlu0 %1182 }
 0x790   :  { %v1185_v57 = vmul.f32 %v1183_v16, %v3281_v17 }
 0x792   :  { %v1187_v58 = vsub.f32 %v3447_v10, %v1185_v57 }
 0x794   :  { %v1189_v18 = vmul.f32 %v1187_v58, %v1187_v58 }
 0x796   :  { %v1193_v19 = vsel %vm364_vm1, %v1189_v18, 0.0 }
 0x797   :  { %1194 = vadd.xlane.f32.xlu2 %v1193_v19 }
 0x7fb   :  { %v1192_v24 = vpop.xlane.xlu1 %1191 }
 0x7fc   :  { %v1196_v25 = vmul.f32 %v1192_v24, %v3281_v17  ;;  %v2396_v24 = vld [vmem:[%s3777_s13 + $0x38] sm:$0xff] }
 0x7fd   :  { %1436 = vmatpush.msra.mxu0 %v2396_v24 }
 0x7fe   :  { %v1198_v26 = vadd.f32 1e-05, %v1196_v25  ;;  %v2402_v25 = vld [vmem:[%s3738_s11 + $0x38] sm:$0xff] }
 0x7ff   :  { %1469 = vmatpush.msra.mxu1 %v2402_v25 }
 0x800   :  { %2555 = vrsqrt.f32 %v1198_v26  ;;  %vm1206_vm6 = vweird.f32 %v1198_v26 }
 0x806   :  { %v2556_v27 = vpop.eup %2555 }
 0x807   :  { %v1201_v28 = vmul.f32 %v2556_v27, %v1198_v26  ;;  %vm1207_vm5 = vweird.f32 %v2556_v27  ;;  %v2389_v26 = vld [vmem:[%s3776_s7 + $0x30] sm:$0xff]  ;;  %s3779_s7 = sld [smem:[#allocation50_spill]] }
 0x808   :  { %vm1208_vm7 = vmor %vm1206_vm6, %vm1207_vm5  ;;  %1404 = vmatpush.msrb.mxu3 %v2389_v26 }
 0x809   :  { %v1202_v31 = vmul.f32 %v2556_v27, %v1201_v28  ;;  %v2401_v28 = vld [vmem:[%s3738_s11 + $0x30] sm:$0xff] }
 0x80a   :  { %v1195_v32 = vpop.xlane.xlu2 %1194  ;;  %1470 = vmatpush.msra.mxu1 %v2401_v28  ;;  %1405 = vmatpush.msrb.mxu3 %v2388_v29 }
 0x80b   :  { %v1203_v33 = vmul.f32 0.5, %v1202_v31  ;;  %v1197_v34 = vmul.f32 %v1195_v32, %v3281_v17  ;;  %v2400_v31 = vld [vmem:[%s3738_s11 + $0x28] sm:$0xff]  ;;  %v2393_v32 = vld [vmem:[%s3777_s13 + $0x20] sm:$0xff] }
 0x80c   :  { %1471 = vmatpush.msra.mxu1 %v2400_v31  ;;  %1406 = vmatpush.msrb.mxu3 %v2387_v1 }
 0x80d   :  { %v1204_v36 = vsub.f32 1.5, %v1203_v33  ;;  %v1199_v37 = vadd.f32 1e-05, %v1197_v34  ;;  %v2399_v33 = vld [vmem:[%s3738_s11 + $0x20] sm:$0xff] }
 0x80e   :  { %1472 = vmatpush.msra.mxu1 %v2399_v33 }
 0x80f   :  { %v1205_v39 = vmul.f32 %v2556_v27, %v1204_v36  ;;  %2557 = vrsqrt.f32 %v1199_v37  ;;  %vm1216_vm9 = vweird.f32 %v1199_v37 }
 0x811   :  { %v1209_v41 = vsel %vm1208_vm7, %v2556_v27, %v1205_v39  ;;  %v2395_v27 = vld [vmem:[%s3777_s13 + $0x30] sm:$0xff] }
 0x812   :  { %v1220_v42 = vmul.f32 %v1209_v41, %v1186_v52  ;;  %1437 = vmatpush.msra.mxu0 %v2395_v27 }
 0x814   :  { %v1225_v44 = vmul.f32 %v2496_v40, %v1220_v42  ;;  %1438 = vmatpush.msra.mxu0 %v2394_v30 }
 0x815   :  { %v2558_v45 = vpop.eup %2557 }
 0x816   :  { %v1211_v46 = vmul.f32 %v2558_v45, %v1199_v37  ;;  %v1230_v47 = vadd.f32 %v2497_v43, %v1225_v44  ;;  %vm1217_vm8 = vweird.f32 %v2558_v45  ;;  %1439 = vmatpush.msra.mxu0 %v2393_v32 }
 0x817   :  { %vm1218_vm10 = vmor %vm1216_vm9, %vm1217_vm8 }
 0x818   :  { %v1212_v48 = vmul.f32 %v2558_v45, %v1211_v46  ;;  %2382 = vmatmul.msk.f32.vlgmr.msrb.gmra.mxu1 %vm364_vm1, %v1230_v47  ;;  %v2500_v46 = vld [vmem:[%s3778_s26 + $0x1] ss:$0 sm:$0xff]  ;;  %s3780_s26 = sld [smem:[#allocation51_spill]] }
 0x81a   :  { %v1213_v49 = vmul.f32 0.5, %v1212_v48 }
 0x81c   :  { %v1214_v50 = vsub.f32 1.5, %v1213_v49  ;;  %v2501_v49 = vld [vmem:[#allocation12 + $0x1] ss:$0 sm:$0xff] }
 0x81e   :  { %v1215_v51 = vmul.f32 %v2558_v45, %v1214_v50 }
 0x820   :  { %v1219_v53 = vsel %vm1218_vm10, %v2558_v45, %v1215_v51 }
 0x821   :  { %v1221_v54 = vmul.f32 %v1219_v53, %v1187_v58 }
 0x823   :  { %v1226_v55 = vmul.f32 %v2496_v40, %v1221_v54 }
 0x825   :  { %v1231_v56 = vadd.f32 %v2497_v43, %v1226_v55 }
 0x827   :  { %2383 = vmatmul.msk.f32.gmra.mxu1 %vm364_vm1, %v1231_v56 }
 0x895   :  { %v1263_v63 = vpop.f32.mrf.mxu1 }
 0x896   :  { %v1264_v0 = vadd.f32 %v2498_v62, %v1263_v63 }
 0x898   :  { %v1269_v2 = vmax.f32 %v1264_v0, 0.0 }
 0x89a   :  { %2384 = vmatmul.msk.f32.vlgmr.msrb.gmra.mxu2 %vm1279_vm11, %v1269_v2  ;;  %v2502_v2 = vld [vmem:[#allocation15 + $0x1] ss:$0 sm:$0xff] }
 0x8a4   :  { %v1266_v3 = vpop.f32.mrf.mxu1 }
 0x8a5   :  { %v1267_v4 = vadd.f32 %v2498_v62, %v1266_v3  ;;  %v2503_v3 = vld [vmem:[#allocation17 + $0x1] ss:$0 sm:$0xff] }
 0x8a7   :  { %v1270_v5 = vmax.f32 %v1267_v4, 0.0 }
 0x8a9   :  { %2385 = vmatmul.msk.f32.gmra.mxu2 %vm1279_vm11, %v1270_v5 }
 0x91d   :  { %v1303_v8 = vpop.f32.mrf.mxu2 }
 0x91e   :  { %v1309_v9 = vadd.f32 %v1303_v8, %v3442_v6 }
 0x920   :  { %v3488_v11 = vadd.f32 %v2499_v7, %v1309_v9  ;;  %v2504_v9 = vld [vmem:[#allocation14 + $0x1] ss:$0 sm:$0xff] }
 0x922   :  { %v1321_v12 = vsel %vm364_vm1, %v3488_v11, 0.0 }
 0x923   :  { %1322 = vadd.xlane.f32.xlu0 %v1321_v12 }
 0x92c   :  { %v1306_v13 = vpop.f32.mrf.mxu2 }
 0x92d   :  { %v1310_v52 = vadd.f32 %v1306_v13, %v3447_v10 }
 0x92f   :  { %v3493_v14 = vadd.f32 %v2499_v7, %v1310_v52 }
 0x931   :  { %v1324_v15 = vsel %vm364_vm1, %v3493_v14, 0.0 }
 0x932   :  { %1325 = vadd.xlane.f32.xlu1 %v1324_v15 }
 0x996   :  { %v1323_v16 = vpop.xlane.xlu0 %1322 }
 0x997   :  { %v1327_v57 = vmul.f32 %v1323_v16, %v3281_v17 }
 0x999   :  { %v1329_v6 = vsub.f32 %v3488_v11, %v1327_v57 }
 0x99b   :  { %v1331_v58 = vmul.f32 %v1329_v6, %v1329_v6 }
 0x99d   :  { %v1333_v18 = vsel %vm364_vm1, %v1331_v58, 0.0 }
 0x99e   :  { %1334 = vadd.xlane.f32.xlu2 %v1333_v18 }
 0x9a5   :  { %v1326_v19 = vpop.xlane.xlu1 %1325 }
 0x9a6   :  { %v1328_v20 = vmul.f32 %v1326_v19, %v3281_v17 }
 0x9a8   :  { %v3502_v10 = vsub.f32 %v3493_v14, %v1328_v20 }
 0x9aa   :  { %v1332_v21 = vmul.f32 %v3502_v10, %v3502_v10 }
 0x9ac   :  { %v1336_v22 = vsel %vm364_vm1, %v1332_v21, 0.0 }
 0x9ad   :  { %1337 = vadd.xlane.f32.xlu0 %v1336_v22 }
 0xa11   :  { %v1335_v34 = vpop.xlane.xlu2 %1334 }
 0xa12   :  { %v1339_v35 = vmul.f32 %v1335_v34, %v3281_v17 }
 0xa14   :  { %v1341_v36 = vadd.f32 1e-05, %v1339_v35 }
 0xa16   :  { %2559 = vrsqrt.f32 %v1341_v36  ;;  %vm1349_vm13 = vweird.f32 %v1341_v36 }
 0xa1c   :  { %v2560_v37 = vpop.eup %2559 }
 0xa1d   :  { %v1344_v38 = vmul.f32 %v2560_v37, %v1341_v36  ;;  %vm1350_vm12 = vweird.f32 %v2560_v37 }
 0xa1e   :  { %vm1351_vm14 = vmor %vm1349_vm13, %vm1350_vm12 }
 0xa1f   :  { %v1345_v39 = vmul.f32 %v2560_v37, %v1344_v38 }
 0xa20   :  { %v1338_v40 = vpop.xlane.xlu0 %1337 }
 0xa21   :  { %v1346_v41 = vmul.f32 0.5, %v1345_v39  ;;  %v1340_v42 = vmul.f32 %v1338_v40, %v3281_v17 }
 0xa23   :  { %v1347_v43 = vsub.f32 1.5, %v1346_v41  ;;  %v1342_v44 = vadd.f32 1e-05, %v1340_v42 }
 0xa25   :  { %v1348_v45 = vmul.f32 %v2560_v37, %v1347_v43  ;;  %2561 = vrsqrt.f32 %v1342_v44  ;;  %vm1359_vm6 = vweird.f32 %v1342_v44 }
 0xa27   :  { %v1352_v47 = vsel %vm1351_vm14, %v2560_v37, %v1348_v45 }
 0xa28   :  { %v1363_v48 = vmul.f32 %v1352_v47, %v1329_v6 }
 0xa2a   :  { %v1368_v50 = vmul.f32 %v2500_v46, %v1363_v48 }
 0xa2b   :  { %v2562_v51 = vpop.eup %2561 }
 0xa2c   :  { %v1354_v53 = vmul.f32 %v2562_v51, %v1342_v44  ;;  %v1373_v54 = vadd.f32 %v2501_v49, %v1368_v50  ;;  %vm1360_vm5 = vweird.f32 %v2562_v51 }
 0xa2d   :  { %vm1361_vm7 = vmor %vm1359_vm6, %vm1360_vm5 }
 0xa2e   :  { %v1355_v55 = vmul.f32 %v2562_v51, %v1354_v53  ;;  %2391 = vmatmul.msk.f32.vlgmr.msrb.gmra.mxu3 %vm364_vm1, %v1373_v54  ;;  %2397 = vmatmul.msk.f32.vlgmr.msra.gmra.mxu0 %vm364_vm1, %v1373_v54 }
 0xa2f   :  { %2403 = vmatmul.msk.f32.vlgmr.msra.gmra.mxu1 %vm364_vm1, %v1373_v54 }
 0xa30   :  { %v1356_v56 = vmul.f32 0.5, %v1355_v55 }
 0xa32   :  { %v1357_v59 = vsub.f32 1.5, %v1356_v56 }
 0xa34   :  { %v1358_v60 = vmul.f32 %v2562_v51, %v1357_v59 }
 0xa36   :  { %v1362_v61 = vsel %vm1361_vm7, %v2562_v51, %v1358_v60 }
 0xa37   :  { %v1364_v62 = vmul.f32 %v1362_v61, %v3502_v10 }
 0xa39   :  { %v1369_v63 = vmul.f32 %v2500_v46, %v1364_v62 }
 0xa3b   :  { %v1374_v0 = vadd.f32 %v2501_v49, %v1369_v63 }
 0xa3d   :  { %2392 = vmatmul.msk.f32.gmra.mxu3 %vm364_vm1, %v1374_v0  ;;  %2398 = vmatmul.msk.f32.gmra.mxu0 %vm364_vm1, %v1374_v0 }
 0xa3e   :  { %2404 = vmatmul.msk.f32.gmra.mxu1 %vm364_vm1, %v1374_v0 }
 0xaab   :  { %v1441_v4 = vpop.f32.mrf.mxu0 }
 0xaac   :  { %v1442_v5 = vadd.f32 %v2502_v2, %v1441_v4  ;;  %v1474_v7 = vpop.f32.mrf.mxu1 }
 0xaad   :  { %v3555_v8 = vadd.f32 %v2503_v3, %v1474_v7 }
 0xaae   :  { %2405 = vmatpush.xpose.msk.msra.mxu3 %vm585_vm15, %v1442_v5  ;;  %1606 = vrot.lane.b32.xlu1 %v1442_v5, %s3054_s12 }
 0xab1   :  { %v1408_v12 = vpop.f32.mrf.mxu3 }
 0xab2   :  { %1574 = vmatpush.msrb.mxu3 %v3555_v8  ;;  %v1409_v13 = vadd.f32 %v2504_v9, %v1408_v12 }
 0xab4   :  { %v1480_v52 = vmul.f32 0.35355338, %v1409_v13 }
 0xab6   :  { %1604 = vrot.lane.b32.xlu2 %v1480_v52, %s3054_s12  ;;  %1748 = vrot.lane.b32.xlu1 %v1442_v5, %s3055_s6 }
 0xab7   :  { %2406 = vmatmul.msk.f32.vlgmr.msra.gmra.mxu3 %vm585_vm15, %v1480_v52 }
 0xaba   :  { %v1444_v15 = vpop.f32.mrf.mxu0 }
 0xabb   :  { %v1445_v16 = vadd.f32 %v2502_v2, %v1444_v15  ;;  %v1477_v57 = vpop.f32.mrf.mxu1 }
 0xabc   :  { %v3563_v6 = vadd.f32 %v2503_v3, %v1477_v57 }
 0xabd   :  { %1634 = vrot.lane.b32.xlu0 %v1445_v16, %s3054_s12  ;;  %2407 = vmatpush.xpose.msk.msra.mxu2 %vm585_vm15, %v1445_v16 }
 0xabe   :  { %1597 = vmatpush.msrb.mxu0 %v3563_v6  ;;  %1746 = vrot.lane.b32.xlu2 %v1480_v52, %s3055_s6 }
 0xabf   :  { %1776 = vrot.lane.b32.xlu1 %v1445_v16, %s3055_s6 }
 0xac0   :  { %v1411_v58 = vpop.f32.mrf.mxu3 }
 0xac1   :  { %v1412_v18 = vadd.f32 %v2504_v9, %v1411_v58  ;;  %v2482_v58 = vpack.i.bf16 %v3563_v6, %v3555_v8 }
 0xac3   :  { %v1481_v19 = vmul.f32 0.35355338, %v1412_v18 }
 0xac5   :  { %1632 = vrot.lane.b32.xlu0 %v1481_v19, %s3054_s12  ;;  %2408 = vmatmul.msk.f32.vlgmr.msra.gmra.mxu2 %vm585_vm15, %v1481_v19 }
 0xac6   :  { %1774 = vrot.lane.b32.xlu2 %v1481_v19, %s3055_s6 }
 0xac7   :  { %1886 = vrot.lane.b32.xlu1 %v1480_v52, %s3056_s15 }
 0xacd   :  { %1888 = vrot.lane.b32.xlu0 %v1442_v5, %s3056_s15 }
 0xace   :  { %1914 = vrot.lane.b32.xlu2 %v1481_v19, %s3056_s15 }
 0xad5   :  { %1916 = vrot.lane.b32.xlu0 %v1445_v16, %s3056_s15 }
 0xb10   :  { %v1605_v10 = vpop.permute.xlu2 %1604 }
 0xb18   :  { %v1747_v22 = vpop.permute.xlu2 %1746 }
 0xb20   :  { %v1607_v20 = vpop.permute.xlu1 %1606  ;;  %v1775_v28 = vpop.permute.xlu2 %1774 }
 0xb21   :  { %2411 = vmatpush.xpose.msk.msrb.mxu1 %vm585_vm15, %v1607_v20 }
 0xb24   :  { %2412 = vmatmul.msk.f32.vlgmr.msrb.gmra.mxu1 %vm585_vm15, %v1605_v10 }
 0xb28   :  { %v1749_v21 = vpop.permute.xlu1 %1748  ;;  %v1915_v33 = vpop.permute.xlu2 %1914 }
 0xb29   :  { %2417 = vmatpush.xpose.msk.msra.mxu1 %vm585_vm15, %v1749_v21 }
 0xb2c   :  { %2418 = vmatmul.msk.f32.vlgmr.msra.gmra.mxu1 %vm585_vm15, %v1747_v22 }
 0xb2f   :  { %v1635_v23 = vpop.permute.xlu0 %1634 }
 0xb30   :  { %2413 = vmatpush.xpose.msk.msrb.mxu2 %vm585_vm15, %v1635_v23 }
 0xb31   :  { %v1777_v24 = vpop.permute.xlu1 %1776 }
 0xb34   :  { %2419 = vmatpush.xpose.msk.msra.mxu2 %vm585_vm15, %v1777_v24 }
 0xb37   :  { %v1633_v25 = vpop.permute.xlu0 %1632 }
 0xb38   :  { %2414 = vmatmul.msk.f32.vlgmr.msrb.gmra.mxu2 %vm585_vm15, %v1633_v25 }
 0xb39   :  { %v1887_v30 = vpop.permute.xlu1 %1886 }
 0xb3a   :  { %v1505_v26 = vpop.f32.mrf.mxu3 }
 0xb3b   :  { %v1534_v27 = vsel %vm585_vm15, %v1505_v26, -inf }
 0xb3c   :  { %1535 = vmax.xlane.f32.xlu1 %v1534_v27 }
 0xb3f   :  { %v1889_v29 = vpop.permute.xlu0 %1888 }
 0xb40   :  { %2420 = vmatmul.msk.f32.vlgmr.msra.gmra.mxu2 %vm585_vm15, %v1775_v28  ;;  %2423 = vmatpush.xpose.msk.msrb.mxu1 %vm585_vm15, %v1889_v29 }
 0xb43   :  { %2424 = vmatmul.msk.f32.vlgmr.msrb.gmra.mxu1 %vm585_vm15, %v1887_v30 }
 0xb47   :  { %v1917_v31 = vpop.permute.xlu0 %1916 }
 0xb48   :  { %v1531_v1 = vpop.f32.mrf.mxu2  ;;  %2425 = vmatpush.xpose.msk.msrb.mxu2 %vm585_vm15, %v1917_v31 }
 0xb49   :  { %v1537_v32 = vsel %vm585_vm15, %v1531_v1, -inf }
 0xb4a   :  { %1538 = vmax.xlane.f32.xlu2 %v1537_v32 }
 0xb4b   :  { %2426 = vmatmul.msk.f32.vlgmr.msrb.gmra.mxu2 %vm585_vm15, %v1915_v33 }
 0xba1   :  { %v1629_v34 = vpop.f32.mrf.mxu1 }
 0xba2   :  { %v1660_v35 = vsel %vm585_vm15, %v1629_v34, -inf }
 0xba3   :  { %1661 = vmax.xlane.f32.xlu0 %v1660_v35 }
 0xba9   :  { %v1771_v36 = vpop.f32.mrf.mxu1 }
 0xbaa   :  { %v1802_v37 = vsel %vm585_vm15, %v1771_v36, -inf }
 0xbab   :  { %1803 = vmax.xlane.f32.xlu1 %v1802_v37 }
 0xbaf   :  { %v1536_v38 = vpop.xlane.xlu1 %1535 }
 0xbb0   :  { %v1540_v39 = vsub.f32 %v1505_v26, %v1536_v38 }
 0xbb2   :  { %v1542_v41 = vmul.f32 1.442695, %v1540_v39 }
 0xbb4   :  { %2563 = vpow2.f32 %v1542_v41 }
 0xbba   :  { %v2564_v50 = vpop.eup %2563 }
 0xbbb   :  { %v1657_v40 = vpop.f32.mrf.mxu2  ;;  %v1546_v54 = vsel %vm585_vm15, %v2564_v50, 0.0 }
 0xbbc   :  { %v1663_v42 = vsel %vm585_vm15, %v1657_v40, -inf }
 0xbbd   :  { %v1539_v43 = vpop.xlane.xlu2 %1538  ;;  %1664 = vmax.xlane.f32.xlu0 %v1663_v42 }
 0xbbe   :  { %v1541_v44 = vsub.f32 %v1531_v1, %v1539_v43 }
 0xbc0   :  { %v1544_v45 = vmul.f32 1.442695, %v1541_v44  ;;  %v1911_v46 = vpop.f32.mrf.mxu1 }
 0xbc1   :  { %v1942_v47 = vsel %vm585_vm15, %v1911_v46, -inf }
 0xbc2   :  { %2565 = vpow2.f32 %v1544_v45  ;;  %1943 = vmax.xlane.f32.xlu2 %v1942_v47 }
 0xbc3   :  { %v1799_v48 = vpop.f32.mrf.mxu2 }
 0xbc4   :  { %v1805_v49 = vsel %vm585_vm15, %v1799_v48, -inf }
 0xbc5   :  { %1806 = vmax.xlane.f32.xlu1 %v1805_v49 }
 0xbc8   :  { %v2566_v51 = vpop.eup %2565 }
 0xbc9   :  { %v1549_v53 = vsel %vm585_vm15, %v2566_v51, 0.0 }
 0xbca   :  { %1550 = vadd.xlane.f32.xlu0 %v1549_v53  ;;  %1547 = vadd.xlane.f32.xlu2 %v1546_v54 }
 0xbce   :  { %v1939_v55 = vpop.f32.mrf.mxu2 }
 0xbcf   :  { %v1945_v56 = vsel %vm585_vm15, %v1939_v55, -inf }
 0xbd2   :  { %1946 = vmax.xlane.f32.xlu0 %v1945_v56 }
 0xbe6   :  { %1824 = vrot.lane.b32.xlu0 %v3555_v8, %s3055_s6 }
 0xc16   :  { %v1662_v59 = vpop.xlane.xlu0 %1661 }
 0xc17   :  { %v1666_v60 = vsub.f32 %v1629_v34, %v1662_v59 }
 0xc19   :  { %v1668_v61 = vmul.f32 1.442695, %v1666_v60 }
 0xc1b   :  { %2567 = vpow2.f32 %v1668_v61 }
 0xc1e   :  { %v1804_v62 = vpop.xlane.xlu1 %1803 }
 0xc1f   :  { %v1808_v63 = vsub.f32 %v1771_v36, %v1804_v62 }
 0xc21   :  { %v2568_v0 = vpop.eup %2567  ;;  %v1810_v2 = vmul.f32 1.442695, %v1808_v63 }
 0xc22   :  { %v1672_v3 = vsel %vm585_vm15, %v2568_v0, 0.0 }
 0xc23   :  { %2569 = vpow2.f32 %v1810_v2  ;;  %1673 = vadd.xlane.f32.xlu1 %v1672_v3 }
 0xc29   :  { %v3602_v4 = vpop.eup %2569 }
 0xc2a   :  { %v1814_v5 = vsel %vm585_vm15, %v3602_v4, 0.0 }
 0xc2b   :  { %1815 = vadd.xlane.f32.xlu2 %v1814_v5 }
 0xc30   :  { %v1665_v7 = vpop.xlane.xlu0 %1664 }
 0xc31   :  { %v1667_v9 = vsub.f32 %v1657_v40, %v1665_v7  ;;  %v2032_v7 = vld [vmem:[#allocation18 + $0x38] sm:$0xff] }
 0xc32   :  { %2051 = vmatpush.msra.mxu1 %v2032_v7 }
 0xc33   :  { %v1670_v12 = vmul.f32 1.442695, %v1667_v9  ;;  %v2031_v9 = vld [vmem:[#allocation18 + $0x30] sm:$0xff] }
 0xc34   :  { %2052 = vmatpush.msra.mxu1 %v2031_v9 }
 0xc35   :  { %2571 = vpow2.f32 %v1670_v12  ;;  %v1944_v13 = vpop.xlane.xlu2 %1943  ;;  %v2030_v12 = vld [vmem:[#allocation18 + $0x28] sm:$0xff] }
 0xc36   :  { %v1948_v52 = vsub.f32 %v1911_v46, %v1944_v13  ;;  %2053 = vmatpush.msra.mxu1 %v2030_v12  ;;  %v2029_v13 = vld [vmem:[#allocation18 + $0x20] sm:$0xff] }
 0xc38   :  { %v1950_v15 = vmul.f32 1.442695, %v1948_v52  ;;  %v1807_v16 = vpop.xlane.xlu1 %1806  ;;  %2054 = vmatpush.msra.mxu1 %v2029_v13  ;;  %v2435_v13 = vld [vmem:[%s3746_s19 + $0x50] sm:$0xff] }
 0xc39   :  { %v1809_v57 = vsub.f32 %v1799_v48, %v1807_v16 }
 0xc3a   :  { %2573 = vpow2.f32 %v1950_v15 }
 0xc3b   :  { %v2572_v18 = vpop.eup %2571  ;;  %v1812_v19 = vmul.f32 1.442695, %v1809_v57 }
 0xc3c   :  { %v1675_v20 = vsel %vm585_vm15, %v2572_v18, 0.0  ;;  %2483 = vrot.lane.b32.xlu1 %v2482_v58, %s3054_s12  ;;  %s3059_s12 = smov [#allocation29]  }
 0xc3d   :  { %v1551_v10 = vpop.xlane.xlu0 %1550  ;;  %1676 = vadd.xlane.f32.xlu0 %v1675_v20  ;;  %v1548_v21 = vpop.xlane.xlu2 %1547  ;;  %v2505_v20 = vld [vmem:[#allocation20 + $0x1] ss:$0 sm:$0xff] }
 0xc3e   :  { %2575 = vrcp.f32 %v1551_v10 }
 0xc3f   :  { %2577 = vrcp.f32 %v1548_v21 }
 0xc40   :  { %v2574_v22 = vpop.eup %2573  ;;  %2579 = vpow2.f32 %v1812_v19 }
 0xc41   :  { %v1954_v23 = vsel %vm585_vm15, %v2574_v22, 0.0 }
 0xc42   :  { %1955 = vadd.xlane.f32.xlu2 %v1954_v23 }
 0xc44   :  { %v2576_v24 = vpop.eup %2575 }
 0xc45   :  { %v2578_v25 = vpop.eup %2577  ;;  %v1555_v26 = vmul.f32 %v2576_v24, %v2566_v51  ;;  %v1947_v30 = vpop.xlane.xlu0 %1946 }
 0xc46   :  { %v2580_v27 = vpop.eup %2579  ;;  %v1554_v28 = vmul.f32 %v2578_v25, %v2564_v50  ;;  %v1949_v31 = vsub.f32 %v1939_v55, %v1947_v30 }
 0xc47   :  { %2410 = vmatmul.msk.f32.vlgmr.msrb.gmra.mxu0 %vm585_vm15, %v1555_v26  ;;  %v1817_v29 = vsel %vm585_vm15, %v2580_v27, 0.0 }
 0xc48   :  { %2409 = vmatmul.msk.f32.vlgmr.msrb.gmra.mxu3 %vm585_vm15, %v1554_v28  ;;  %v1952_v1 = vmul.f32 1.442695, %v1949_v31 }
 0xc4a   :  { %1818 = vadd.xlane.f32.xlu2 %v1817_v29  ;;  %2581 = vpow2.f32 %v1952_v1 }
 0xc50   :  { %v2582_v32 = vpop.eup %2581 }
 0xc51   :  { %1850 = vrot.lane.b32.xlu0 %v3563_v6, %s3055_s6  ;;  %v1957_v33 = vsel %vm585_vm15, %v2582_v32, 0.0  ;;  %s2325_s6 = sshll.u32 %s3059_s12, 4  ;;  %s2326_s6 = int_to_ptr.vmem [resolvable:$true] %s2325_s6 }
 0xc58   :  { %v1825_v35 = vpop.permute.xlu0 %1824 }
 0xc59   :  { %1990 = vrot.lane.b32.xlu0 %v3563_v6, %s3056_s15 }
 0xc62   :  { %1964 = vrot.lane.b32.xlu2 %v3555_v8, %s3056_s15 }
 0xc66   :  { %1958 = vadd.xlane.f32.xlu1 %v1957_v33 }
 0xc96   :  { %v1674_v34 = vpop.xlane.xlu1 %1673 }
 0xc97   :  { %2583 = vrcp.f32 %v1674_v34 }
 0xc9d   :  { %v2584_v37 = vpop.eup %2583 }
 0xc9e   :  { %v1816_v36 = vpop.xlane.xlu2 %1815  ;;  %v1680_v41 = vmul.f32 %v2584_v37, %v2568_v0  ;;  %v2131_v37 = vld [vmem:[#allocation24 + $0x28] sm:$0xff] }
 0xc9f   :  { %2585 = vrcp.f32 %v1816_v36  ;;  %v2132_v36 = vld [vmem:[#allocation24 + $0x30] sm:$0xff] }
 0xca5   :  { %v2586_v8 = vpop.eup %2585 }
 0xca6   :  { %v1822_v44 = vmul.f32 %v2586_v8, %v3602_v4 }
 0xcae   :  { %v2484_v38 = vpop.permute.xlu1 %2483 }
 0xcaf   :  { %v2486_v39 = vunpack.i.h.bf16 %v2484_v38  ;;  %v2485_v40 = vunpack.i.l.bf16 %v2484_v38  ;;  %v2130_v38 = vld [vmem:[#allocation24 + $0x20] sm:$0xff] }
 0xcb0   :  { %v1677_v42 = vpop.xlane.xlu0 %1676 }
 0xcb1   :  { %2587 = vrcp.f32 %v1677_v42  ;;  %1704 = vmatpush.msra.mxu3 %v2485_v40  ;;  %1731 = vmatpush.msra.mxu0 %v2486_v39 }
 0xcb2   :  { %2415 = vmatmul.msk.f32.vlgmr.msra.gmra.mxu3 %vm585_vm15, %v1680_v41 }
 0xcb3   :  { %1845 = vmatpush.msrb.mxu3 %v1825_v35  ;;  %v2133_v35 = vld [vmem:[#allocation24 + $0x38] sm:$0xff] }
 0xcb4   :  { %2157 = vmatpush.msra.mxu2 %v2133_v35 }
 0xcb5   :  { %v1956_v6 = vpop.xlane.xlu2 %1955 }
 0xcb6   :  { %2589 = vrcp.f32 %v1956_v6  ;;  %2158 = vmatpush.msra.mxu2 %v2132_v36 }
 0xcb7   :  { %v2588_v43 = vpop.eup %2587 }
 0xcb8   :  { %v1681_v45 = vmul.f32 %v2588_v43, %v2572_v18  ;;  %2159 = vmatpush.msra.mxu2 %v2131_v37  ;;  %v3058_v37 = vmov 16.0  }
 0xcba   :  { %2416 = vmatmul.msk.f32.vlgmr.msra.gmra.mxu0 %vm585_vm15, %v1681_v45  ;;  %2421 = vmatmul.msk.f32.vlgmr.msrb.gmra.mxu3 %vm585_vm15, %v1822_v44 }
 0xcbb   :  { %2160 = vmatpush.msra.mxu2 %v2130_v38 }
 0xcbc   :  { %v2590_v47 = vpop.eup %2589 }
 0xcbd   :  { %v1819_v46 = vpop.xlane.xlu2 %1818  ;;  %v1962_v51 = vmul.f32 %v2590_v47, %v2574_v22 }
 0xcbe   :  { %2591 = vrcp.f32 %v1819_v46  ;;  %v2506_v46 = vld [vmem:[#allocation21 + $0x1] ss:$0 sm:$0xff] }
 0xcc3   :  { %v1851_v48 = vpop.permute.xlu0 %1850 }
 0xcc4   :  { %v2592_v49 = vpop.eup %2591  ;;  %v1599_v50 = vpop.f32.mrf.mxu0  ;;  %1871 = vmatpush.msrb.mxu0 %v1851_v48 }
 0xcc5   :  { %v1823_v53 = vmul.f32 %v2592_v49, %v2580_v27  ;;  %1603 = vst.msk [vmem:[#allocation2 + $0x8] sm:$0xff] %vm585_vm15, %v1599_v50  ;;  %v1965_v54 = vpop.permute.xlu2 %1964  ;;  %v2507_v49 = vld [vmem:[#allocation23 + $0x1] ss:$0 sm:$0xff] }
 0xcc6   :  { %1985 = vmatpush.msra.mxu3 %v1965_v54  ;;  %v2439_v54 = vld [vmem:[%s3746_s19 + $0x70] sm:$0xff] }
 0xcc7   :  { %2422 = vmatmul.msk.f32.vlgmr.msrb.gmra.mxu0 %vm585_vm15, %v1823_v53  ;;  %2427 = vmatmul.msk.f32.vlgmr.msra.gmra.mxu3 %vm585_vm15, %v1962_v51  ;;  %v2440_v53 = vld [vmem:[%s3746_s19 + $0x78] sm:$0xff] }
 0xcc8   :  { %2193 = vmatpush.msrb.mxu3 %v2440_v53 }
 0xcca   :  { %2194 = vmatpush.msrb.mxu3 %v2439_v54 }
 0xccb   :  { %v1576_v55 = vpop.f32.mrf.mxu3  ;;  %v1991_v56 = vpop.permute.xlu0 %1990 }
 0xccc   :  { %1602 = vst.msk [vmem:[#allocation2] sm:$0xff] %vm585_vm15, %v1576_v55  ;;  %2011 = vmatpush.msra.mxu0 %v1991_v56  ;;  %v2438_v55 = vld [vmem:[%s3746_s19 + $0x68] sm:$0xff] }
 0xccd   :  { %2195 = vmatpush.msrb.mxu3 %v2438_v55 }
 0xcd9   :  { %v1959_v59 = vpop.xlane.xlu1 %1958 }
 0xcda   :  { %2593 = vrcp.f32 %v1959_v59 }
 0xce0   :  { %v2594_v60 = vpop.eup %2593 }
 0xce1   :  { %v1963_v61 = vmul.f32 %v2594_v60, %v2582_v32  ;;  %v2437_v60 = vld [vmem:[%s3746_s19 + $0x60] sm:$0xff] }
 0xce2   :  { %2196 = vmatpush.msrb.mxu3 %v2437_v60 }
 0xce3   :  { %2428 = vmatmul.msk.f32.vlgmr.msra.gmra.mxu0 %vm585_vm15, %v1963_v61 }
 0xd35   :  { %v1706_v62 = vpop.f32.mrf.mxu3 }
 0xd36   :  { %1738 = vrot.lane.b32.xlu2 %v1706_v62, %s3035_s28  ;;  %v2436_v62 = vld [vmem:[%s3746_s19 + $0x58] sm:$0xff] }
 0xd37   :  { %v1733_v0 = vpop.f32.mrf.mxu0  ;;  %2197 = vmatpush.msrb.mxu3 %v2436_v62 }
 0xd39   :  { %2198 = vmatpush.msrb.mxu3 %v2435_v13 }
 0xd3d   :  { %v1847_v63 = vpop.f32.mrf.mxu3 }
 0xd3e   :  { %1878 = vrot.lane.b32.xlu0 %v1847_v63, %s3038_s24 }
 0xd44   :  { %v1873_v3 = vpop.f32.mrf.mxu0 }
 0xd46   :  { %1740 = vrot.lane.b32.xlu0 %v1733_v0, %s3035_s28 }
 0xd4a   :  { %v1987_v2 = vpop.f32.mrf.mxu3 }
 0xd4b   :  { %2018 = vrot.lane.b32.xlu2 %v1987_v2, %s3057_s1 }
 0xd53   :  { %1880 = vrot.lane.b32.xlu2 %v1873_v3, %s3038_s24 }
 0xd60   :  { %v2013_v4 = vpop.f32.mrf.mxu0 }
 0xd61   :  { %2020 = vrot.lane.b32.xlu0 %v2013_v4, %s3057_s1 }
 0xd90   :  { %v1739_v5 = vpop.permute.xlu2 %1738 }
 0xd91   :  { %1744 = vst.msk [vmem:[#allocation2] sm:$0xff] %vm848_vm2, %v1739_v5 }
 0xda5   :  { %v2019_v52 = vpop.permute.xlu2 %2018 }
 0xdad   :  { %v1881_v57 = vpop.permute.xlu2 %1880 }
 0xdb0   :  { %v1879_v15 = vpop.permute.xlu0 %1878 }
 0xdb1   :  { %1884 = vst.msk [vmem:[#allocation2] sm:$0xff] %vm989_vm3, %v1879_v15  ;;  %v2433_v15 = vld [vmem:[%s3746_s19 + $0x40] sm:$0xff] }
 0xdb2   :  { %2024 = vst.msk [vmem:[#allocation2] sm:$0xff] %vm1130_vm4, %v2019_v52  ;;  %v2434_v52 = vld [vmem:[%s3746_s19 + $0x48] sm:$0xff] }
 0xdb3   :  { %2199 = vmatpush.msrb.mxu3 %v2434_v52 }
 0xdb5   :  { %2200 = vmatpush.msrb.mxu3 %v2433_v15 }
 0xdb8   :  { %v1741_v16 = vpop.permute.xlu0 %1740 }
 0xdb9   :  { %1745 = vst.msk [vmem:[#allocation2 + $0x8] sm:$0xff] %vm848_vm2, %v1741_v16  ;;  %v2026_v58 = vld [vmem:[#allocation2] sm:$0xff] }
 0xdba   :  { %1885 = vst.msk [vmem:[#allocation2 + $0x8] sm:$0xff] %vm989_vm3, %v1881_v57  ;;  %2429 = vmatmul.msk.f32.vlgmr.msra.gmra.mxu1 %vm364_vm1, %v2026_v58  ;;  %v2508_v16 = vld [vmem:[#allocation26 + $0x1] ss:$0 sm:$0xff] }
 0xdd3   :  { %v2021_v18 = vpop.permute.xlu0 %2020 }
 0xdd4   :  { %2025 = vst.msk [vmem:[#allocation2 + $0x8] sm:$0xff] %vm1130_vm4, %v2021_v18 }
 0xddb   :  { %v2027_v19 = vld [vmem:[#allocation2 + $0x8] sm:$0xff] }
 0xddc   :  { %2430 = vmatmul.msk.f32.gmra.mxu1 %vm364_vm1, %v2027_v19  ;;  %v2220_v19 = vld [vmem:[%s3748_s21 + $0x18] sm:$0xff] }
 0xddd   :  { %2243 = vmatpush.msrb.mxu0 %v2220_v19 }
 0xe37   :  { %v2056_v10 = vpop.f32.mrf.mxu1 }
 0xe38   :  { %v2062_v21 = vadd.f32 %v2056_v10, %v3488_v11 }
 0xe3a   :  { %v3645_v22 = vadd.f32 %v2505_v20, %v2062_v21 }
 0xe3c   :  { %v2075_v23 = vsel %vm364_vm1, %v3645_v22, 0.0 }
 0xe3d   :  { %2076 = vadd.xlane.f32.xlu2 %v2075_v23  ;;  %v2219_v23 = vld [vmem:[%s3748_s21 + $0x10] sm:$0xff] }
 0xe3e   :  { %2244 = vmatpush.msrb.mxu0 %v2219_v23 }
 0xe59   :  { %v2059_v24 = vpop.f32.mrf.mxu1 }
 0xe5a   :  { %v2063_v25 = vadd.f32 %v2059_v24, %v3493_v14  ;;  %v2218_v24 = vld [vmem:[%s3748_s21 + $0x8] sm:$0xff] }
 0xe5b   :  { %2245 = vmatpush.msrb.mxu0 %v2218_v24 }
 0xe5c   :  { %v3650_v26 = vadd.f32 %v2505_v20, %v2063_v25  ;;  %v2217_v25 = vld [vmem:[%s3748_s21] sm:$0xff] }
 0xe5d   :  { %2246 = vmatpush.msrb.mxu0 %v2217_v25 }
 0xe5e   :  { %v2078_v27 = vsel %vm364_vm1, %v3650_v26, 0.0 }
 0xe5f   :  { %2079 = vadd.xlane.f32.xlu1 %v2078_v27  ;;  %v2509_v27 = vld [vmem:[#allocation27 + $0x1] ss:$0 sm:$0xff] }
 0xeb0   :  { %v2077_v28 = vpop.xlane.xlu2 %2076 }
 0xeb1   :  { %v2081_v29 = vmul.f32 %v2077_v28, %v3281_v17 }
 0xeb3   :  { %v2083_v11 = vsub.f32 %v3645_v22, %v2081_v29 }
 0xeb5   :  { %v2085_v30 = vmul.f32 %v2083_v11, %v2083_v11 }
 0xeb7   :  { %v2087_v31 = vsel %vm364_vm1, %v2085_v30, 0.0 }
 0xeb8   :  { %2088 = vadd.xlane.f32.xlu0 %v2087_v31 }
 0xed2   :  { %v2080_v1 = vpop.xlane.xlu1 %2079 }
 0xed3   :  { %v2082_v32 = vmul.f32 %v2080_v1, %v3281_v17 }
 0xed5   :  { %v2084_v14 = vsub.f32 %v3650_v26, %v2082_v32  ;;  %v2510_v32 = vld [vmem:[%s3749_s22] ss:$0 sm:$0xff] }
 0xed7   :  { %v2086_v33 = vmul.f32 %v2084_v14, %v2084_v14 }
 0xed9   :  { %v2090_v34 = vsel %vm364_vm1, %v2086_v33, 0.0 }
 0xeda   :  { %2091 = vadd.xlane.f32.xlu1 %v2090_v34 }
 0xf2b   :  { %v2089_v39 = vpop.xlane.xlu0 %2088 }
 0xf2c   :  { %v2093_v40 = vmul.f32 %v2089_v39, %v3281_v17 }
 0xf2e   :  { %v2095_v41 = vadd.f32 1e-05, %v2093_v40 }
 0xf30   :  { %2595 = vrsqrt.f32 %v2095_v41  ;;  %vm2103_vm2 = vweird.f32 %v2095_v41 }
 0xf36   :  { %v2596_v42 = vpop.eup %2595 }
 0xf37   :  { %v2098_v8 = vmul.f32 %v2596_v42, %v2095_v41  ;;  %vm2104_vm15 = vweird.f32 %v2596_v42 }
 0xf38   :  { %vm2105_vm3 = vmor %vm2103_vm2, %vm2104_vm15 }
 0xf39   :  { %v2099_v6 = vmul.f32 %v2596_v42, %v2098_v8 }
 0xf3b   :  { %v2100_v43 = vmul.f32 0.5, %v2099_v6 }
 0xf3d   :  { %v2101_v44 = vsub.f32 1.5, %v2100_v43 }
 0xf3f   :  { %v2102_v45 = vmul.f32 %v2596_v42, %v2101_v44 }
 0xf41   :  { %v2106_v47 = vsel %vm2105_vm3, %v2596_v42, %v2102_v45 }
 0xf42   :  { %v2117_v48 = vmul.f32 %v2106_v47, %v2083_v11 }
 0xf44   :  { %v2122_v50 = vmul.f32 %v2506_v46, %v2117_v48 }
 0xf46   :  { %v2127_v51 = vadd.f32 %v2507_v49, %v2122_v50 }
 0xf48   :  { %2431 = vmatmul.msk.f32.vlgmr.msra.gmra.mxu2 %vm364_vm1, %v2127_v51 }
 0xf4d   :  { %v2092_v56 = vpop.xlane.xlu1 %2091 }
 0xf4e   :  { %v2094_v59 = vmul.f32 %v2092_v56, %v3281_v17 }
 0xf50   :  { %v2096_v61 = vadd.f32 1e-05, %v2094_v59 }
 0xf52   :  { %2597 = vrsqrt.f32 %v2096_v61  ;;  %vm2113_vm8 = vweird.f32 %v2096_v61 }
 0xf53   :  { %2599 = vrcp.f32 %v3058_v37 }
 0xf58   :  { %v2598_v63 = vpop.eup %2597 }
 0xf59   :  { %v2108_v0 = vmul.f32 %v2598_v63, %v2096_v61  ;;  %vm2114_vm4 = vweird.f32 %v2598_v63 }
 0xf5a   :  { %vm2115_vm9 = vmor %vm2113_vm8, %vm2114_vm4 }
 0xf5b   :  { %v2109_v2 = vmul.f32 %v2598_v63, %v2108_v0 }
 0xf5d   :  { %v2110_v3 = vmul.f32 0.5, %v2109_v2 }
 0xf5f   :  { %v2111_v4 = vsub.f32 1.5, %v2110_v3  ;;  %v2512_v3 = vld [vmem:[%s3780_s26] ss:$0 sm:$0xff] }
 0xf61   :  { %v2112_v17 = vmul.f32 %v2598_v63, %v2111_v4 }
 0xf63   :  { %v2116_v5 = vsel %vm2115_vm9, %v2598_v63, %v2112_v17  ;;  %v2511_v63 = vld [vmem:[%s3779_s7] ss:$0 sm:$0xff] }
 0xf64   :  { %v2118_v7 = vmul.f32 %v2116_v5, %v2084_v14 }
 0xf66   :  { %v2123_v9 = vmul.f32 %v2506_v46, %v2118_v7 }
 0xf68   :  { %v2128_v12 = vadd.f32 %v2507_v49, %v2123_v9 }
 0xf6a   :  { %2432 = vmatmul.msk.f32.gmra.mxu2 %vm364_vm1, %v2128_v12 }
 0xfcb   :  { %v2162_v57 = vpop.f32.mrf.mxu2 }
 0xfcc   :  { %v2163_v58 = vadd.f32 %v2508_v16, %v2162_v57 }
 0xfce   :  { %v2168_v18 = vmax.f32 %v2163_v58, 0.0 }
 0xfd0   :  { %2441 = vmatmul.msk.f32.vlgmr.msrb.gmra.mxu3 %vm1279_vm11, %v2168_v18 }
 0xfed   :  { %v2165_v20 = vpop.f32.mrf.mxu2 }
 0xfee   :  { %v2166_v10 = vadd.f32 %v2508_v16, %v2165_v20 }
 0xff0   :  { %v2169_v21 = vmax.f32 %v2166_v10, 0.0 }
 0xff2   :  { %2442 = vmatmul.msk.f32.gmra.mxu3 %vm1279_vm11, %v2169_v21 }
0x1053   :  { %v2202_v28 = vpop.f32.mrf.mxu3 }
0x1054   :  { %v2208_v29 = vadd.f32 %v2202_v28, %v3645_v22 }
0x1056   :  { %v2215_v11 = vadd.f32 %v2509_v27, %v2208_v29 }
0x1058   :  { %2443 = vmatmul.msk.f32.vlgmr.msrb.gmra.mxu0 %vm364_vm1, %v2215_v11 }
0x1075   :  { %v2205_v30 = vpop.f32.mrf.mxu3 }
0x1076   :  { %v2209_v31 = vadd.f32 %v2205_v30, %v3650_v26  ;;  %v2600_v26 = vpop.eup %2599 }
0x1077   :  { %v2263_v38 = vmul.f32 16.0, %v2600_v26 }
0x1078   :  { %v2216_v1 = vadd.f32 %v2509_v27, %v2209_v31 }
0x1079   :  { %v2264_v39 = vsub.f32 1.0, %v2263_v38 }
0x107a   :  { %2444 = vmatmul.msk.f32.gmra.mxu0 %vm364_vm1, %v2216_v1  ;;  %vm2267_vm1 = vweird.f32 %v2600_v26 }
0x107b   :  { %v2265_v40 = vmul.f32 %v2600_v26, %v2264_v39 }
0x107d   :  { %v2266_v41 = vadd.f32 %v2600_v26, %v2265_v40 }
0x107f   :  { %v2268_v42 = vsel %vm2267_vm1, %v2600_v26, %v2266_v41 }
0x10d5   :  { %v2248_v14 = vpop.f32.mrf.mxu0 }
0x10d6   :  { %v2249_v33 = vadd.f32 %v2510_v32, %v2248_v14 }
0x10d8   :  { %v2256_v34 = vsel %vm332_vm0, %v2249_v33, 0.0 }
0x10d9   :  { %2257 = vadd.xlane.f32.xlu1 %v2256_v34 }
0x10f7   :  { %v2251_v35 = vpop.f32.mrf.mxu0 }
0x10f8   :  { %v2252_v22 = vadd.f32 %v2510_v32, %v2251_v35 }
0x10fa   :  { %v2259_v36 = vsel %vm332_vm0, %v2252_v22, 0.0 }
0x10fb   :  { %2260 = vadd.xlane.f32.xlu1 %v2259_v36 }
0x114c   :  { %v2258_v8 = vpop.xlane.xlu1 %2257 }
0x114d   :  { %v2269_v6 = vmul.f32 %v2268_v42, %v2258_v8 }
0x114f   :  { %v2271_v43 = vsub.f32 %v2249_v33, %v2269_v6 }
0x1151   :  { %v2273_v44 = vmul.f32 %v2271_v43, %v2271_v43 }
0x1153   :  { %v2275_v45 = vsel %vm332_vm0, %v2273_v44, 0.0 }
0x1154   :  { %2276 = vadd.xlane.f32.xlu1 %v2275_v45 }
0x116e   :  { %v2261_v46 = vpop.xlane.xlu1 %2260 }
0x116f   :  { %v2270_v47 = vmul.f32 %v2268_v42, %v2261_v46 }
0x1171   :  { %v2272_v48 = vsub.f32 %v2252_v22, %v2270_v47 }
0x1173   :  { %v2274_v49 = vmul.f32 %v2272_v48, %v2272_v48 }
0x1175   :  { %v2278_v50 = vsel %vm332_vm0, %v2274_v49, 0.0 }
0x1176   :  { %2279 = vadd.xlane.f32.xlu1 %v2278_v50 }
0x11c7   :  { %v2277_v51 = vpop.xlane.xlu1 %2276 }
0x11c8   :  { %v2281_v53 = vmul.f32 %v2277_v51, %v2268_v42 }
0x11ca   :  { %v2283_v54 = vadd.f32 1e-05, %v2281_v53 }
0x11cc   :  { %2601 = vrsqrt.f32 %v2283_v54  ;;  %vm2291_vm11 = vweird.f32 %v2283_v54 }
0x11d2   :  { %v2602_v55 = vpop.eup %2601 }
0x11d3   :  { %v2286_v56 = vmul.f32 %v2602_v55, %v2283_v54  ;;  %vm2292_vm10 = vweird.f32 %v2602_v55 }
0x11d4   :  { %vm2293_vm12 = vmor %vm2291_vm11, %vm2292_vm10 }
0x11d5   :  { %v2287_v59 = vmul.f32 %v2602_v55, %v2286_v56 }
0x11d7   :  { %v2288_v60 = vmul.f32 0.5, %v2287_v59 }
0x11d9   :  { %v2289_v61 = vsub.f32 1.5, %v2288_v60 }
0x11db   :  { %v2290_v62 = vmul.f32 %v2602_v55, %v2289_v61 }
0x11dd   :  { %v2294_v0 = vsel %vm2293_vm12, %v2602_v55, %v2290_v62 }
0x11de   :  { %v2305_v2 = vmul.f32 %v2294_v0, %v2271_v43 }
0x11e0   :  { %v2310_v4 = vmul.f32 %v2511_v63, %v2305_v2 }
0x11e2   :  { %v2315_v17 = vadd.f32 %v2512_v3, %v2310_v4 }
0x11e4   :  { %v2317_v5 = vmax.f32 %v2315_v17, 0.0 }
0x11e6   :  { %2319 = vst.msk [vmem:[#allocation29] sm:$0xff] %vm332_vm0, %v2317_v5 }
0x11e9   :  { %v2280_v7 = vpop.xlane.xlu1 %2279 }
0x11ea   :  { %v2282_v9 = vmul.f32 %v2280_v7, %v2268_v42 }
0x11ec   :  { %v2284_v12 = vadd.f32 1e-05, %v2282_v9 }
0x11ee   :  { %2603 = vrsqrt.f32 %v2284_v12  ;;  %vm2301_vm14 = vweird.f32 %v2284_v12 }
0x11f4   :  { %v2604_v13 = vpop.eup %2603 }
0x11f5   :  { %v2296_v52 = vmul.f32 %v2604_v13, %v2284_v12  ;;  %vm2302_vm13 = vweird.f32 %v2604_v13 }
0x11f6   :  { %vm2303_vm5 = vmor %vm2301_vm14, %vm2302_vm13 }
0x11f7   :  { %v2297_v15 = vmul.f32 %v2604_v13, %v2296_v52 }
0x11f9   :  { %v2298_v16 = vmul.f32 0.5, %v2297_v15 }
0x11fb   :  { %v2299_v57 = vsub.f32 1.5, %v2298_v16 }
0x11fd   :  { %v2300_v58 = vmul.f32 %v2604_v13, %v2299_v57 }
0x11ff   :  { %v2304_v18 = vsel %vm2303_vm5, %v2604_v13, %v2300_v58 }
0x1200   :  { %v2306_v19 = vmul.f32 %v2304_v18, %v2272_v48 }
0x1202   :  { %v2311_v20 = vmul.f32 %v2511_v63, %v2306_v19 }
0x1204   :  { %v2316_v10 = vadd.f32 %v2512_v3, %v2311_v20 }
0x1206   :  { %v2318_v21 = vmax.f32 %v2316_v10, 0.0 }
0x1208   :  { %2320 = vst.msk [vmem:[#allocation29 + $0x8] sm:$0xff] %vm332_vm0, %v2318_v21 }
0x1209   :  { %2333 = dma.vmem_to_hbm [thread:$0]  %s2326_s6, 256, %s2328_s10, [#allocation5], %s3034_s4, %s3034_s4, %s3035_s28  }
0x120a   :  { %3031 = dma.done.wait [#allocation5], 256  }
0x120b   :  { %3032 = vsyncadd [#allocation5], 4294967040 }
0x120c   :  { %2338 = vsyncpa [#allocation4], 1 }
0x120d   :  { %2339 = vsyncpa [#allocation7], 1 }
0x120e   :  { %2340 = vsyncpa [#allocation10], 1 }
0x120f   :  { %2341 = vsyncpa [#allocation13], 1 }
0x1210   :  { %2342 = vsyncpa [#allocation16], 1 }
0x1211   :  { %2343 = vsyncpa [#allocation19], 1 }
0x1212   :  { %2344 = vsyncpa [#allocation22], 1 }
0x1213   :  { %2345 = vsyncpa [#allocation25], 1 }
0x1214   :  { %2346 = vsyncpa [#allocation28], 1 }
0x1215   :  { %2347 = vsyncpa [#allocation5], 1 }

</bundles_post_ra>
